<compile_context>
chip_gen: v7x
topology: tpu7x:2x2x1
jax: 0.10.0
libtpu: 0.0.40
codegen_flags: <defaults>
</compile_context>

<pallas_src>
import functools

import jax
import jax.numpy as jnp
from jax import lax
from jax.experimental import pallas as pl
from jax.experimental.pallas import tpu as pltpu


def _round_up(a, b):
    return (a + b - 1) // b * b


def _resblock_kernel(xt_ref, pool_ref, xxh_ref, xw1_ref, wd_ref, scale_ref, shift_ref,
                     o_ref, *, k, n_valid, knn_bf16, idx_bits):
    """One (batch, row-tile) step: kNN -> gather -> folded 1x1 conv -> BN(eval) ->
    ReLU -> max over k -> residual add, written channels-major."""
    x_tile = xt_ref[0]                        # (TN, Cp) f32 query rows (f32 for residual)
    pool = pool_ref[0]                        # (Npool, Cp) bf16|f32 gather pool
    xxh = xxh_ref[0]                          # (1, Npool) f32 = 0.5*||x_j||^2
    xw1 = xw1_ref[0]                          # (Npool, Cp) bf16 = pool @ W1 (hoisted)
    npool = pool.shape[0]

    x_bf = x_tile.astype(jnp.bfloat16)        # single bf16 cast, reused below

    # Ordering-equivalent pairwise distance: per query row i, argsort_j of
    #   s[i, j] = x_i . x_j - 0.5*||x_j||^2
    # equals argsort_j of -||x_i - x_j||^2 (per-row constants drop out of top-k).
    lhs = x_bf if knn_bf16 else x_tile        # f32 path keeps default matmul precision
    gram = lax.dot_general(lhs, pool, (((1,), (1,)), ((), ())),
                           preferred_element_type=jnp.float32)           # (TN, Npool)
    s = gram - xxh

    col = lax.broadcasted_iota(jnp.int32, (1, npool), 1)                 # (1, Npool)
    if n_valid < npool:
        s = jnp.where(col < n_valid, s, jnp.float32(-1e30))              # never pick padding

    # Sortable int32 keys (monotone in s) with the column index packed into the low
    # idx_bits, so every row maximum is unique and `key == max` is directly the
    # one-hot (smaller column index wins exact/truncated ties).
    bits = pltpu.bitcast(s, jnp.int32)
    key = jnp.where(bits < 0, bits ^ jnp.int32(0x7FFFFFFF), bits)
    key = (key & jnp.int32(-(1 << idx_bits))) | (jnp.int32(npool - 1) - col)

    # 1x1 conv folded: y_k = nbr_k @ W1 + x @ (W2 - W1) = onehot_k @ xw1 + base2.
    base2 = lax.dot_general(x_bf, wd_ref[...], (((1,), (0,)), ((), ())),
                            preferred_element_type=jnp.float32)          # (TN, Cp)

    knocked = jnp.int32(-(2 ** 31))
    key_work = key
    g_max = None
    g_min = None
    for it in range(k):                       # k is small & static
        maxv = jnp.max(key_work, axis=1, keepdims=True)                  # (TN, 1) int32
        hit = key_work == maxv                                           # unique per row
        g = jnp.dot(hit.astype(jnp.bfloat16), xw1,
                    preferred_element_type=jnp.float32)                  # (TN, Cp) MXU gather
        if g_max is None:
            g_max = g
            g_min = g
        else:
            g_max = jnp.maximum(g_max, g)
            g_min = jnp.minimum(g_min, g)
        if it < k - 1:
            key_work = jnp.where(hit, knocked, key_work)                 # drop selected column
    # TODO(synk): switch to lax.fori_loop(..., unroll=True) carrying (key_work, g_max,
    # g_min) if k ever grows beyond ~8 (bounds vreg live ranges).

    # max_k relu(scale*(g_k + base2) + shift)
    #   = relu(((max_k g_k if scale>=0 else min_k g_k) + base2) * scale + shift)
    scale = scale_ref[...]                                               # (1, Cp)
    shift = shift_ref[...]                                               # (1, Cp)
    g_sel = jnp.where(scale >= 0.0, g_max, g_min)
    out = jnp.maximum((g_sel + base2) * scale + shift, 0.0) + x_tile     # BN + ReLU + residual
    o_ref[0] = out.T.astype(o_ref.dtype)                                 # (Cp, TN) channels-major


def res_block_forward(x, conv_w, bn_gamma, bn_beta, bn_mean, bn_var,
                      *, k=5, eps=1e-5, knn_bf16=True):
    """Pallas ResBlock.forward.

    x:        (B, C, N) float32
    conv_w:   (O, 2C)   1x1 Conv2d weight (bias=False), squeezed from (O, 2C, 1, 1)
    bn_*:     (O,)      BatchNorm2d affine params / running stats (eval mode)
    knn_bf16: run the pairwise-distance gram in bf16 (default; faster on the MXU,
              may swap neighbours at near-ties).  False = f32 gram.
    returns:  (B, O, N)
    """
    B, C, N = x.shape
    O = conv_w.shape[0]
    assert conv_w.shape[1] == 2 * C
    assert O == C, "residual add requires output_channel == input_channel"
    assert N >= k

    # ---- fold BatchNorm (eval mode) into per-channel scale/shift ----------------
    inv_std = (bn_gamma / jnp.sqrt(bn_var + eps)).astype(jnp.float32)
    shift_v = (bn_beta - bn_mean * inv_std).astype(jnp.float32)

    # ---- padding: channels to lanes, pool and row axes independently ------------
    LANE = 128
    Cp = _round_up(C, LANE)                   # padded channels == padded out-channels
    Npool = _round_up(N, LANE)                # gather-pool / pd lane width

    # ---- VMEM-budgeted row tile --------------------------------------------------
    try:
        vmem_cap = int(pltpu.get_tpu_info().vmem_capacity_bytes)
    except Exception:
        vmem_cap = 128 * 1024 * 1024
    vmem_budget = min(vmem_cap * 3 // 4, 96 << 20)       # used for TN sizing
    vmem_limit = min(vmem_cap * 7 // 8, 110 << 20)       # compiler scoped-VMEM cap

    pool_esz = 2 if knn_bf16 else 4
    fixed = (2 * Npool * Cp * (pool_esz + 2)              # pool + xw1 (double-buffered)
             + 2 * Npool * 4                              # 0.5*||x_j||^2 row
             + 2 * Cp * Cp * 2 + (1 << 20))               # wdiff + scale/shift + slack
    per_row = Npool * 14 + Cp * 16                        # (TN,Npool) live planes + x/out tiles
    tn_cap = 512 if vmem_cap >= (100 << 20) else 256      # absolute ceiling per generation
    tn_budget = max((vmem_budget - fixed) // per_row, 128)
    TN = int(min(tn_cap, tn_budget))
    if _round_up(N, 8) <= TN:
        TN = _round_up(N, 8)                  # single row tile covers all queries
    else:
        TN = max(128, (TN // 128) * 128)      # multi-tile: keep channels-major stores legal
    n_tiles = pl.cdiv(N, TN)
    Nrow = n_tiles * TN
    Npad = max(Nrow, Npool)

    # ---- pack operands (points-major, zero-padded) -------------------------------
    x_t = jnp.transpose(x, (0, 2, 1)).astype(jnp.float32)                 # (B, N, C)
    x_pad = jnp.pad(x_t, ((0, 0), (0, Npad - N), (0, Cp - C)))            # (B, Npad, Cp)

    pool_dt = jnp.bfloat16 if knn_bf16 else jnp.float32
    pool = x_pad[:, :Npool, :].astype(pool_dt)                            # (B, Npool, Cp)
    xxh = 0.5 * jnp.sum(x_pad[:, :Npool, :] ** 2, axis=2)[:, None, :]     # (B, 1, Npool)

    w1t = jnp.zeros((Cp, Cp), jnp.float32).at[:C, :O].set(
        jnp.transpose(conv_w[:, :C]).astype(jnp.float32))                 # acts on (nbr - x)
    w2t = jnp.zeros((Cp, Cp), jnp.float32).at[:C, :O].set(
        jnp.transpose(conv_w[:, C:]).astype(jnp.float32))                 # acts on x
    xw1 = jnp.einsum('bnc,cd->bnd', x_pad[:, :Npool, :], w1t).astype(jnp.bfloat16)
    wdiff = (w2t - w1t).astype(jnp.bfloat16)
    scale_p = jnp.zeros((1, Cp), jnp.float32).at[0, :O].set(inv_std)
    shift_p = jnp.zeros((1, Cp), jnp.float32).at[0, :O].set(shift_v)

    idx_bits = max(1, int(Npool - 1).bit_length())

    grid = (B, n_tiles)                        # both axes independent -> megacore-parallel
    out_cm = pl.pallas_call(
        functools.partial(_resblock_kernel, k=k, n_valid=N, knn_bf16=knn_bf16,
                          idx_bits=idx_bits),
        out_shape=jax.ShapeDtypeStruct((B, Cp, Nrow), jnp.float32),
        grid_spec=pltpu.PrefetchScalarGridSpec(
            num_scalar_prefetch=0,
            grid=grid,
            in_specs=[
                pl.BlockSpec((1, TN, Cp), lambda b, t: (b, t, 0)),        # query row tile (f32)
                pl.BlockSpec((1, Npool, Cp), lambda b, t: (b, 0, 0)),     # gather pool
                pl.BlockSpec((1, 1, Npool), lambda b, t: (b, 0, 0)),      # 0.5*||x_j||^2
                pl.BlockSpec((1, Npool, Cp), lambda b, t: (b, 0, 0)),     # pool @ W1 (bf16)
                pl.BlockSpec((Cp, Cp), lambda b, t: (0, 0)),              # (W2 - W1)^T (bf16)
                pl.BlockSpec((1, Cp), lambda b, t: (0, 0)),               # BN scale
                pl.BlockSpec((1, Cp), lambda b, t: (0, 0)),               # BN shift
            ],
            out_specs=pl.BlockSpec((1, Cp, TN), lambda b, t: (b, 0, t)),  # channels-major
        ),
        compiler_params=pltpu.CompilerParams(
            dimension_semantics=("parallel", "parallel"),
            vmem_limit_bytes=int(vmem_limit),
        ),
    )(x_pad, pool, xxh, xw1, wdiff, scale_p, shift_p)

    return out_cm[:, :O, :N]                                              # (B, O, N), no transpose


def _reference_forward(x, conv_w, bn_gamma, bn_beta, bn_mean, bn_var, *, k=5, eps=1e-5):
    """Pure-JAX port of ResBlock.forward (eval-mode BatchNorm) for verification."""
    xt = jnp.transpose(x, (0, 2, 1))                                      # (B, N, C)
    inner = jnp.einsum('bic,bjc->bij', xt, xt, precision='highest')       # x_i . x_j
    xx = jnp.sum(xt * xt, axis=2)                                         # (B, N)
    pd = 2.0 * inner - xx[:, :, None] - xx[:, None, :]
    idx = jax.lax.top_k(pd, k)[1]                                         # (B, N, k)
    nbrs = jax.vmap(lambda pts, ind: pts[ind])(xt, idx)                   # (B, N, k, C)
    feat = jnp.concatenate(
        [nbrs - xt[:, :, None, :],
         jnp.broadcast_to(xt[:, :, None, :], nbrs.shape)], axis=-1)       # (B, N, k, 2C)
    y = jnp.einsum('bnkc,oc->bnko', feat, conv_w, precision='highest')    # 1x1 conv
    y = (y - bn_mean) * (bn_gamma / jnp.sqrt(bn_var + eps)) + bn_beta     # BN (eval)
    y = jnp.maximum(y, 0.0)                                               # ReLU
    y = jnp.max(y, axis=2)                                                # max over k
    return jnp.transpose(y + xt, (0, 2, 1))                               # (B, O, N)


if __name__ == "__main__":
    B, C, N = 2, 4, 16          # batch, channels (= input_channel = output_channel), num_points
    O = C                       # residual add forces output_channel == input_channel
    K = 5                       # self.k in the module

    key = jax.random.PRNGKey(0)
    k1, k2, k3, k4, k5, k6 = jax.random.split(key, 6)
    x = jax.random.normal(k1, (B, C, N), jnp.float32)
    conv_w = 0.1 * jax.random.normal(k2, (O, 2 * C), jnp.float32)         # Conv2d(2C, O, 1, bias=False)
    bn_gamma = 1.0 + 0.1 * jax.random.normal(k3, (O,), jnp.float32)
    bn_beta = 0.1 * jax.random.normal(k4, (O,), jnp.float32)
    bn_mean = 0.1 * jax.random.normal(k5, (O,), jnp.float32)
    bn_var = 1.0 + jnp.abs(jax.random.normal(k6, (O,), jnp.float32))

    ref = _reference_forward(x, conv_w, bn_gamma, bn_beta, bn_mean, bn_var, k=K)

    # f32-gram path: neighbour selection faithful to the f32 reference -> tight check.
    out = res_block_forward(x, conv_w, bn_gamma, bn_beta, bn_mean, bn_var, k=K,
                            knn_bf16=False)
    jax.block_until_ready(out)
    assert out.shape == (B, O, N) and out.dtype == jnp.float32
    err = float(jnp.max(jnp.abs(out - ref)))
    assert jnp.allclose(out, ref, rtol=2e-2, atol=2e-2), f"max abs err {err}"

    # Default fast path (bf16 kNN gram): may legitimately swap near-tied neighbours,
    # so only sanity-check it.
    out_fast = res_block_forward(x, conv_w, bn_gamma, bn_beta, bn_mean, bn_var, k=K)
    jax.block_until_ready(out_fast)
    assert out_fast.shape == (B, O, N)
    assert bool(jnp.all(jnp.isfinite(out_fast)))

    print("KERNEL_OK")
</pallas_src>

<mosaic_0001>
module attributes {stable_mosaic.version = 11 : i64} {
  func.func @_resblock_kernel(%arg0: i32, %arg1: i32, %arg2: memref<1x16x128xf32, #tpu.memory_space<vmem>>, %arg3: memref<1x128x128xf32, #tpu.memory_space<vmem>>, %arg4: memref<1x1x128xf32, #tpu.memory_space<vmem>>, %arg5: memref<1x128x128xbf16, #tpu.memory_space<vmem>>, %arg6: memref<128x128xbf16, #tpu.memory_space<vmem>>, %arg7: memref<1x128xf32, #tpu.memory_space<vmem>>, %arg8: memref<1x128xf32, #tpu.memory_space<vmem>>, %arg9: memref<1x128x16xf32, #tpu.memory_space<vmem>>) attributes {dimension_semantics = [#tpu.dimension_semantics<parallel>, #tpu.dimension_semantics<parallel>], iteration_bounds = array<i64: 2, 1>, scalar_prefetch = 0 : i64, scratch_operands = 0 : i64, tpu.core_type = #tpu.core_type<tc>, window_params = [{transform_indices = @transform_0, window_bounds = array<i64: 1, 16, 128>}, {transform_indices = @transform_1, window_bounds = array<i64: 1, 128, 128>}, {transform_indices = @transform_2, window_bounds = array<i64: 1, 1, 128>}, {transform_indices = @transform_3, window_bounds = array<i64: 1, 128, 128>}, {pipeline_mode = #tpu.pipeline_mode<synchronous>, transform_indices = @transform_4, window_bounds = array<i64: 128, 128>}, {pipeline_mode = #tpu.pipeline_mode<synchronous>, transform_indices = @transform_5, window_bounds = array<i64: 1, 128>}, {pipeline_mode = #tpu.pipeline_mode<synchronous>, transform_indices = @transform_6, window_bounds = array<i64: 1, 128>}, {transform_indices = @transform_7, window_bounds = array<i64: 1, 128, 16>}]} {
    %c0 = arith.constant 0 : index
    %c0_0 = arith.constant 0 : index
    %c0_1 = arith.constant 0 : index
    %0 = vector.load %arg2[%c0, %c0_0, %c0_1] : memref<1x16x128xf32, #tpu.memory_space<vmem>>, vector<1x16x128xf32>
    %1 = vector.shape_cast %0 : vector<1x16x128xf32> to vector<16x128xf32>
    %c0_2 = arith.constant 0 : index
    %c0_3 = arith.constant 0 : index
    %c0_4 = arith.constant 0 : index
    %2 = vector.load %arg3[%c0_2, %c0_3, %c0_4] : memref<1x128x128xf32, #tpu.memory_space<vmem>>, vector<1x128x128xf32>
    %3 = vector.shape_cast %2 : vector<1x128x128xf32> to vector<128x128xf32>
    %c0_5 = arith.constant 0 : index
    %c0_6 = arith.constant 0 : index
    %c0_7 = arith.constant 0 : index
    %4 = vector.load %arg4[%c0_5, %c0_6, %c0_7] : memref<1x1x128xf32, #tpu.memory_space<vmem>>, vector<1x1x128xf32>
    %5 = vector.shape_cast %4 : vector<1x1x128xf32> to vector<1x128xf32>
    %c0_8 = arith.constant 0 : index
    %c0_9 = arith.constant 0 : index
    %c0_10 = arith.constant 0 : index
    %6 = vector.load %arg5[%c0_8, %c0_9, %c0_10] : memref<1x128x128xbf16, #tpu.memory_space<vmem>>, vector<1x128x128xbf16>
    %7 = vector.shape_cast %6 : vector<1x128x128xbf16> to vector<128x128xbf16>
    %8 = arith.truncf %1 : vector<16x128xf32> to vector<16x128xbf16>
    %cst = arith.constant dense<0.000000e+00> : vector<16x128xf32>
    %9 = tpu.matmul %1, %3, %cst {dimension_numbers = #tpu.dot_dimension_numbers<[1], [1], [0], [0], [0, 0, 1, 0], [], []>} : vector<16x128xf32>, vector<128x128xf32>, vector<16x128xf32> -> vector<16x128xf32>
    %10 = vector.broadcast %5 : vector<1x128xf32> to vector<16x128xf32>
    %11 = arith.subf %9, %10 : vector<16x128xf32>
    %12 = tpu.iota {dimensions = array<i32: 1>} : vector<1x128xi32>
    %c16_i32 = arith.constant 16 : i32
    %13 = vector.broadcast %c16_i32 : i32 to vector<1x128xi32>
    %14 = arith.cmpi slt, %12, %13 : vector<1x128xi32>
    %cst_11 = arith.constant -1.000000e+30 : f32
    %15 = vector.shape_cast %14 : vector<1x128xi1> to vector<1x128xi1>
    %16 = vector.broadcast %15 : vector<1x128xi1> to vector<16x128xi1>
    %17 = vector.broadcast %cst_11 : f32 to vector<16x128xf32>
    %18 = arith.select %16, %11, %17 : vector<16x128xi1>, vector<16x128xf32>
    %19 = tpu.bitcast %18 : vector<16x128xf32> -> vector<16x128xi32>
    %c0_i32 = arith.constant 0 : i32
    %20 = vector.broadcast %c0_i32 : i32 to vector<16x128xi32>
    %21 = arith.cmpi slt, %19, %20 : vector<16x128xi32>
    %c2147483647_i32 = arith.constant 2147483647 : i32
    %22 = vector.broadcast %c2147483647_i32 : i32 to vector<16x128xi32>
    %23 = arith.xori %19, %22 : vector<16x128xi32>
    %24 = arith.select %21, %23, %19 : vector<16x128xi1>, vector<16x128xi32>
    %c-128_i32 = arith.constant -128 : i32
    %25 = vector.broadcast %c-128_i32 : i32 to vector<16x128xi32>
    %26 = arith.andi %24, %25 : vector<16x128xi32>
    %c127_i32 = arith.constant 127 : i32
    %27 = vector.broadcast %c127_i32 : i32 to vector<1x128xi32>
    %28 = arith.subi %27, %12 : vector<1x128xi32>
    %29 = vector.broadcast %28 : vector<1x128xi32> to vector<16x128xi32>
    %30 = arith.ori %26, %29 : vector<16x128xi32>
    %c0_12 = arith.constant 0 : index
    %c0_13 = arith.constant 0 : index
    %31 = vector.load %arg6[%c0_12, %c0_13] : memref<128x128xbf16, #tpu.memory_space<vmem>>, vector<128x128xbf16>
    %cst_14 = arith.constant dense<0.000000e+00> : vector<16x128xf32>
    %32 = tpu.matmul %8, %31, %cst_14 {dimension_numbers = #tpu.dot_dimension_numbers<[1], [0], [0], [1], [0, 0, 1, 1], [], []>} : vector<16x128xbf16>, vector<128x128xbf16>, vector<16x128xf32> -> vector<16x128xf32>
    %cst_15 = arith.constant dense<-2147483648> : vector<16xi32>
    %33 = vector.multi_reduction <maxsi>, %30, %cst_15 [1] : vector<16x128xi32> to vector<16xi32>
    %34 = vector.shape_cast %33 : vector<16xi32> to vector<16x1xi32>
    %35 = vector.broadcast %34 : vector<16x1xi32> to vector<16x128xi32>
    %36 = arith.cmpi eq, %30, %35 : vector<16x128xi32>
    %37 = arith.extui %36 : vector<16x128xi1> to vector<16x128xi32>
    %38 = arith.sitofp %37 : vector<16x128xi32> to vector<16x128xf32>
    %39 = arith.truncf %38 : vector<16x128xf32> to vector<16x128xbf16>
    %cst_16 = arith.constant dense<0.000000e+00> : vector<16x128xf32>
    %40 = tpu.matmul %39, %7, %cst_16 {dimension_numbers = #tpu.dot_dimension_numbers<[1], [0], [0], [1], [0, 0, 1, 1], [], []>} : vector<16x128xbf16>, vector<128x128xbf16>, vector<16x128xf32> -> vector<16x128xf32>
    %c-2147483648_i32 = arith.constant -2147483648 : i32
    %41 = vector.broadcast %c-2147483648_i32 : i32 to vector<16x128xi32>
    %42 = arith.select %36, %41, %30 : vector<16x128xi1>, vector<16x128xi32>
    %cst_17 = arith.constant dense<-2147483648> : vector<16xi32>
    %43 = vector.multi_reduction <maxsi>, %42, %cst_17 [1] : vector<16x128xi32> to vector<16xi32>
    %44 = vector.shape_cast %43 : vector<16xi32> to vector<16x1xi32>
    %45 = vector.broadcast %44 : vector<16x1xi32> to vector<16x128xi32>
    %46 = arith.cmpi eq, %42, %45 : vector<16x128xi32>
    %47 = arith.extui %46 : vector<16x128xi1> to vector<16x128xi32>
    %48 = arith.sitofp %47 : vector<16x128xi32> to vector<16x128xf32>
    %49 = arith.truncf %48 : vector<16x128xf32> to vector<16x128xbf16>
    %cst_18 = arith.constant dense<0.000000e+00> : vector<16x128xf32>
    %50 = tpu.matmul %49, %7, %cst_18 {dimension_numbers = #tpu.dot_dimension_numbers<[1], [0], [0], [1], [0, 0, 1, 1], [], []>} : vector<16x128xbf16>, vector<128x128xbf16>, vector<16x128xf32> -> vector<16x128xf32>
    %51 = arith.maximumf %40, %50 : vector<16x128xf32>
    %52 = arith.minimumf %40, %50 : vector<16x128xf32>
    %c-2147483648_i32_19 = arith.constant -2147483648 : i32
    %53 = vector.broadcast %c-2147483648_i32_19 : i32 to vector<16x128xi32>
    %54 = arith.select %46, %53, %42 : vector<16x128xi1>, vector<16x128xi32>
    %cst_20 = arith.constant dense<-2147483648> : vector<16xi32>
    %55 = vector.multi_reduction <maxsi>, %54, %cst_20 [1] : vector<16x128xi32> to vector<16xi32>
    %56 = vector.shape_cast %55 : vector<16xi32> to vector<16x1xi32>
    %57 = vector.broadcast %56 : vector<16x1xi32> to vector<16x128xi32>
    %58 = arith.cmpi eq, %54, %57 : vector<16x128xi32>
    %59 = arith.extui %58 : vector<16x128xi1> to vector<16x128xi32>
    %60 = arith.sitofp %59 : vector<16x128xi32> to vector<16x128xf32>
    %61 = arith.truncf %60 : vector<16x128xf32> to vector<16x128xbf16>
    %cst_21 = arith.constant dense<0.000000e+00> : vector<16x128xf32>
    %62 = tpu.matmul %61, %7, %cst_21 {dimension_numbers = #tpu.dot_dimension_numbers<[1], [0], [0], [1], [0, 0, 1, 1], [], []>} : vector<16x128xbf16>, vector<128x128xbf16>, vector<16x128xf32> -> vector<16x128xf32>
    %63 = arith.maximumf %51, %62 : vector<16x128xf32>
    %64 = arith.minimumf %52, %62 : vector<16x128xf32>
    %c-2147483648_i32_22 = arith.constant -2147483648 : i32
    %65 = vector.broadcast %c-2147483648_i32_22 : i32 to vector<16x128xi32>
    %66 = arith.select %58, %65, %54 : vector<16x128xi1>, vector<16x128xi32>
    %cst_23 = arith.constant dense<-2147483648> : vector<16xi32>
    %67 = vector.multi_reduction <maxsi>, %66, %cst_23 [1] : vector<16x128xi32> to vector<16xi32>
    %68 = vector.shape_cast %67 : vector<16xi32> to vector<16x1xi32>
    %69 = vector.broadcast %68 : vector<16x1xi32> to vector<16x128xi32>
    %70 = arith.cmpi eq, %66, %69 : vector<16x128xi32>
    %71 = arith.extui %70 : vector<16x128xi1> to vector<16x128xi32>
    %72 = arith.sitofp %71 : vector<16x128xi32> to vector<16x128xf32>
    %73 = arith.truncf %72 : vector<16x128xf32> to vector<16x128xbf16>
    %cst_24 = arith.constant dense<0.000000e+00> : vector<16x128xf32>
    %74 = tpu.matmul %73, %7, %cst_24 {dimension_numbers = #tpu.dot_dimension_numbers<[1], [0], [0], [1], [0, 0, 1, 1], [], []>} : vector<16x128xbf16>, vector<128x128xbf16>, vector<16x128xf32> -> vector<16x128xf32>
    %75 = arith.maximumf %63, %74 : vector<16x128xf32>
    %76 = arith.minimumf %64, %74 : vector<16x128xf32>
    %c-2147483648_i32_25 = arith.constant -2147483648 : i32
    %77 = vector.broadcast %c-2147483648_i32_25 : i32 to vector<16x128xi32>
    %78 = arith.select %70, %77, %66 : vector<16x128xi1>, vector<16x128xi32>
    %cst_26 = arith.constant dense<-2147483648> : vector<16xi32>
    %79 = vector.multi_reduction <maxsi>, %78, %cst_26 [1] : vector<16x128xi32> to vector<16xi32>
    %80 = vector.shape_cast %79 : vector<16xi32> to vector<16x1xi32>
    %81 = vector.broadcast %80 : vector<16x1xi32> to vector<16x128xi32>
    %82 = arith.cmpi eq, %78, %81 : vector<16x128xi32>
    %83 = arith.extui %82 : vector<16x128xi1> to vector<16x128xi32>
    %84 = arith.sitofp %83 : vector<16x128xi32> to vector<16x128xf32>
    %85 = arith.truncf %84 : vector<16x128xf32> to vector<16x128xbf16>
    %cst_27 = arith.constant dense<0.000000e+00> : vector<16x128xf32>
    %86 = tpu.matmul %85, %7, %cst_27 {dimension_numbers = #tpu.dot_dimension_numbers<[1], [0], [0], [1], [0, 0, 1, 1], [], []>} : vector<16x128xbf16>, vector<128x128xbf16>, vector<16x128xf32> -> vector<16x128xf32>
    %87 = arith.maximumf %75, %86 : vector<16x128xf32>
    %88 = arith.minimumf %76, %86 : vector<16x128xf32>
    %c0_28 = arith.constant 0 : index
    %c0_29 = arith.constant 0 : index
    %89 = vector.load %arg7[%c0_28, %c0_29] : memref<1x128xf32, #tpu.memory_space<vmem>>, vector<1x128xf32>
    %c0_30 = arith.constant 0 : index
    %c0_31 = arith.constant 0 : index
    %90 = vector.load %arg8[%c0_30, %c0_31] : memref<1x128xf32, #tpu.memory_space<vmem>>, vector<1x128xf32>
    %cst_32 = arith.constant 0.000000e+00 : f32
    %91 = vector.broadcast %cst_32 : f32 to vector<1x128xf32>
    %92 = arith.cmpf oge, %89, %91 : vector<1x128xf32>
    %93 = vector.shape_cast %92 : vector<1x128xi1> to vector<1x128xi1>
    %94 = vector.broadcast %93 : vector<1x128xi1> to vector<16x128xi1>
    %95 = arith.select %94, %87, %88 : vector<16x128xi1>, vector<16x128xf32>
    %96 = arith.addf %95, %32 : vector<16x128xf32>
    %97 = vector.broadcast %89 : vector<1x128xf32> to vector<16x128xf32>
    %98 = arith.mulf %96, %97 : vector<16x128xf32>
    %99 = vector.broadcast %90 : vector<1x128xf32> to vector<16x128xf32>
    %100 = arith.addf %98, %99 : vector<16x128xf32>
    %cst_33 = arith.constant 0.000000e+00 : f32
    %101 = vector.broadcast %cst_33 : f32 to vector<16x128xf32>
    %102 = arith.maximumf %100, %101 : vector<16x128xf32>
    %103 = arith.addf %102, %1 : vector<16x128xf32>
    %104 = tpu.transpose %103, [1, 0] : vector<16x128xf32> -> vector<128x16xf32>
    %c0_34 = arith.constant 0 : index
    %c0_35 = arith.constant 0 : index
    %c0_36 = arith.constant 0 : index
    %105 = vector.load %arg9[%c0_34, %c0_35, %c0_36] : memref<1x128x16xf32, #tpu.memory_space<vmem>>, vector<1x128x16xf32>
    %106 = vector.shape_cast %105 : vector<1x128x16xf32> to vector<128x16xf32>
    %107 = vector.shape_cast %104 : vector<128x16xf32> to vector<1x128x16xf32>
    tpu.vector_store %arg9[%c0_34, %c0_35, %c0_36], %107 {strides = array<i32>} : memref<1x128x16xf32, #tpu.memory_space<vmem>>, vector<1x128x16xf32>,
    return
  }
  func.func @transform_0(%arg0: i32, %arg1: i32) -> (i32, i32, i32) {
    %c0_i32 = arith.constant 0 : i32
    %c0_i32_0 = arith.constant 0 : i32
    return %arg0, %arg1, %c0_i32 : i32, i32, i32
  }
  func.func @transform_1(%arg0: i32, %arg1: i32) -> (i32, i32, i32) {
    %c0_i32 = arith.constant 0 : i32
    %c0_i32_0 = arith.constant 0 : i32
    %c0_i32_1 = arith.constant 0 : i32
    return %arg0, %c0_i32, %c0_i32_0 : i32, i32, i32
  }
  func.func @transform_2(%arg0: i32, %arg1: i32) -> (i32, i32, i32) {
    %c0_i32 = arith.constant 0 : i32
    %c0_i32_0 = arith.constant 0 : i32
    %c0_i32_1 = arith.constant 0 : i32
    return %arg0, %c0_i32, %c0_i32_0 : i32, i32, i32
  }
  func.func @transform_3(%arg0: i32, %arg1: i32) -> (i32, i32, i32) {
    %c0_i32 = arith.constant 0 : i32
    %c0_i32_0 = arith.constant 0 : i32
    %c0_i32_1 = arith.constant 0 : i32
    return %arg0, %c0_i32, %c0_i32_0 : i32, i32, i32
  }
  func.func @transform_4(%arg0: i32, %arg1: i32) -> (i32, i32) {
    %c0_i32 = arith.constant 0 : i32
    %c0_i32_0 = arith.constant 0 : i32
    %c0_i32_1 = arith.constant 0 : i32
    return %c0_i32, %c0_i32_0 : i32, i32
  }
  func.func @transform_5(%arg0: i32, %arg1: i32) -> (i32, i32) {
    %c0_i32 = arith.constant 0 : i32
    %c0_i32_0 = arith.constant 0 : i32
    %c0_i32_1 = arith.constant 0 : i32
    return %c0_i32, %c0_i32_0 : i32, i32
  }
  func.func @transform_6(%arg0: i32, %arg1: i32) -> (i32, i32) {
    %c0_i32 = arith.constant 0 : i32
    %c0_i32_0 = arith.constant 0 : i32
    %c0_i32_1 = arith.constant 0 : i32
    return %c0_i32, %c0_i32_0 : i32, i32
  }
  func.func @transform_7(%arg0: i32, %arg1: i32) -> (i32, i32, i32) {
    %c0_i32 = arith.constant 0 : i32
    %c0_i32_0 = arith.constant 0 : i32
    return %arg0, %c0_i32, %arg1 : i32, i32, i32
  }
}

</mosaic_0001>

<bundles_post_ra>
// kernel: tpu_custom_call.1
= control target key start
LH: loop header
LB: loop body
LE: loop exit
PB: predicated region body
PF: predicated region fallthrough
CT: control target
= control target key end

     0   :  { %s2937_s0 = inlined_call_operand.hbm [shape: f32[2,128,128], index: 0, kind: input, shape index: {}]   ;;  %s2938_s1 = inlined_call_operand.hbm [shape: f32[2,128,128], index: 1, kind: input, shape index: {}]   ;;  %s2939_s2 = inlined_call_operand.hbm [shape: f32[2,1,128], index: 2, kind: input, shape index: {}]   ;;  %s2940_s3 = inlined_call_operand.hbm [shape: bf16[2,128,128], index: 3, kind: input, shape index: {}]   ;;  %s2941_s4 = inlined_call_operand.hbm [shape: bf16[128,128], index: 4, kind: input, shape index: {}]   ;;  %s2942_s5 = inlined_call_operand.hbm [shape: f32[1,128], index: 5, kind: input, shape index: {}]   ;;  %s2943_s6 = inlined_call_operand.hbm [shape: f32[1,128], index: 6, kind: input, shape index: {}]   ;;  %s2944_s7 = inlined_call_operand.hbm [shape: f32[2,128,16], index: 7, kind: output, shape index: {}]  }
   0x1   :  { %2965 = sst [smem:[#allocation27_spill]] %s2937_s0 }
   0x2   :  { %2966 = sst [smem:[#allocation28_spill]] %s2938_s1 }
   0x3   :  { %2967 = sst [smem:[#allocation29_spill]] %s2941_s4 }
   0x4   :  { %2968 = sst [smem:[#allocation30_spill]] %s2942_s5 }
   0x5   :  { %2969 = sst [smem:[#allocation31_spill]] %s2944_s7 }
   0x6   :  { %12 = vsyncpa [#allocation3], 0 }
   0x7   :  { %14 = vsyncpa [#allocation3 + $0x1], 0 }
   0x8   :  { %15 = vsyncpa [#allocation6], 0 }
   0x9   :  { %17 = vsyncpa [#allocation6 + $0x1], 0 }
   0xa   :  { %18 = vsyncpa [#allocation9], 0 }
   0xb   :  { %20 = vsyncpa [#allocation9 + $0x1], 0 }
   0xc   :  { %21 = vsyncpa [#allocation12], 0 }
   0xd   :  { %22 = vsyncpa [#allocation4], 0 }
   0xe   :  { %24 = vsyncpa [#allocation4 + $0x1], 0  ;;  %s2264_s24 = smov 0   ;;  %s2266_s25 = smov 0  }
   0xf   :  { %s2268_s26 = smov 0   ;;  %s2270_s27 = smov 0  }
  0x10   :  { %s2272_s28 = smov 0   ;;  %s2274_s29 = smov 0  }
  0x11 LB: > { %2970 = sst [smem:[#allocation21_spill]] %s2184_s24  ;;  %s2295_s30 = sadd.s32 4294967295, %s2204_s29   ;;  %s2204_s29 = sphi %s2274_s29, %s30_s29   ;;  %s2200_s28 = sphi %s2272_s28, %s3019_s28   ;;  %s2196_s27 = sphi %s2270_s27, %s3018_s27   ;;  %s2192_s26 = sphi %s2268_s26, %s3014_s26   ;;  %s2188_s25 = sphi %s2266_s25, %s3017_s25   ;;  %s2184_s24 = sphi %s2264_s24, %s3016_s24  }
  0x12   : > { %2971 = sst [smem:[#allocation22_spill]] %s2192_s26  ;;  %s1438_s8 = sadd.s32 4294967294, %s2204_s29  }
  0x13   : > { %p58_p0 = scmp.ne.s32.totalorder %s2192_s26, %s2188_s25  ;;  %p59_p1 = scmp.eq.s32.totalorder %s2204_s29, 0 }
  0x14   : > { %p64_p2 = scmp.ne.s32.totalorder %s2188_s25, %s2184_s24  ;;  %p2946_p3 = scmp.eq.s32.totalorder %s2295_s30, 0 }
  0x15   : > { %p231_p4 = scmp.eq.s32.totalorder %s2295_s30, 1  ;;  %p2306_p5 = por %p59_p1, %p58_p0 }
  0x16   : > { %p237_p6 = scmp.eq.s32.totalorder %s1438_s8, 1  ;;  %p2312_p7 = por %p2946_p3, %p64_p2 }
  0x17   : > { %p2316_p8 = por %p231_p4, %p58_p0  ;;  %p1439_p10 = scmp.ge.s32.totalorder %s2204_s29, 1 }
  0x18   : > { %s2973_s11 = scalar_select %p2312_p7, 1, 0 }
  0x19   : > { %s2974_s12 = scalar_select %p2316_p8, 1, 0 }
  0x1a   : > { %p2320_p9 = por %p237_p6, %p64_p2  ;;  %p244_p11 = scmp.lt.s32.totalorder %s2204_s29, 3 }
  0x1b   : > { %2975 = sst [smem:[#allocation23_spill]] %s2974_s12  ;;  %s2206_s15 = smov [#allocation10]  }
  0x1c   : > { %s2976_s13 = scalar_select %p2320_p9, 1, 0 }
  0x1d   : > { %p2326_p12 = pnand %p1439_p10, %p244_p11  ;;  %s256_s16 = sshll.u32 %s2206_s15, 4  ;;  %s2330_s16 = int_to_ptr.vmem [resolvable:$true] %s256_s16 }
  0x1e   : > { %2977 = sst [smem:[#allocation24_spill]] %s2976_s13  ;;  %s2207_s18 = smov [#allocation11]  }
  0x1f   : > { %s2978_s14 = scalar_select %p2326_p12, 1, 0 }
  0x20   : > { %p1790_p13 = pneg %p2326_p12  ;;  %s270_s19 = sshll.u32 %s2207_s18, 4  ;;  %s2341_s19 = int_to_ptr.vmem [resolvable:$true] %s270_s19 }
  0x21   : > { %s2980_s4 = sld [smem:[#allocation29_spill]] }
  0x22   : > { %p2337_p1 = pnand %p1790_p13, %p2946_p3 }
  0x24   : > { %s2979_s17 = scalar_select %p2337_p1, 1, 0 }
  0x25   : > { %p2352_p4 = pneg %p2337_p1 }
  0x27   : > { %s1902_s23 = scalar_lea.hbm %s2980_s4, 1024 }
  0x28   : > { %p1903_p2 = scmp.ne.s32.totalorder %s2980_s4, %s1902_s23  ;;  %p1909_p11 = scmp.lt.u32.totalorder %s1902_s23, %s2980_s4 }
  0x29   : > { %s2981_s9 = scalar_select %p2352_p4, 1, 0 }
  0x2a   : > { %p1905_p6 = pnand %p2352_p4, %p1903_p2 }
  0x2c   : > { %p1906_p10 = pneg %p1905_p6 }
  0x2e   : > { %p1911_p13 = pnand %p1909_p11, %p1906_p10 }
  0x30   : > { %1914 = shalt.err (!%p1911_p13)
}
  0x31   : > { %s1915_s21 = scalar_lea.vmem %s2330_s16, 1024  ;;  %p1923_p8 = scmp.lt.s32.totalorder %s2330_s16, %s2330_s16 }
  0x32   : > { %p1916_p0 = scmp.ne.s32.totalorder %s2330_s16, %s1915_s21  ;;  %p1924_p7 = scmp.lt.s32.totalorder %s1915_s21, %s1915_s21 }
  0x34   : > { %p1918_p3 = pnand %p1916_p0, %p2352_p4  ;;  %p1925_p2 = por %p1924_p7, %p1923_p8 }
  0x36   : > { %p1919_p9 = pneg %p1918_p3 }
  0x38   : > { %p1926_p6 = pnand %p1925_p2, %p1919_p9 }
  0x3a   : > { %1929 = shalt.err (!%p1926_p6)
}
  0x3b   : > { %s2953_s22 = smov 64   ;;  %s2954_s13 = smov 4  }
  0x3c   : > { %1793 = dma.hbm_to_vmem [thread:$0]  (!%p2337_p1), %s2980_s4, 1024, %s2330_s16, [#allocation9], %s2953_s22, %s2953_s22, %s2954_s13  }
  0x3d   : > { %s2982_s5 = sld [smem:[#allocation30_spill]] }
  0x43   : > { %s1930_s21 = scalar_lea.hbm %s2982_s5, 16 }
  0x44   : > { %p1931_p3 = scmp.ne.s32.totalorder %s2982_s5, %s1930_s21  ;;  %p1937_p9 = scmp.lt.u32.totalorder %s1930_s21, %s2982_s5 }
  0x46   : > { %p1933_p7 = pnand %p1931_p3, %p2352_p4 }
  0x48   : > { %p1934_p8 = pneg %p1933_p7 }
  0x4a   : > { %p1939_p0 = pnand %p1937_p9, %p1934_p8 }
  0x4c   : > { %1942 = shalt.err (!%p1939_p0)
}
  0x4d   : > { %s1943_s16 = scalar_lea.vmem %s2341_s19, 16  ;;  %s1950_s24 = scalar_lea.vmem %s2341_s19, 32 }
  0x4e   : > { %p1944_p10 = scmp.ne.s32.totalorder %s2341_s19, %s1943_s16  ;;  %p1951_p2 = scmp.lt.s32.totalorder %s2341_s19, %s2341_s19 }
  0x4f   : > { %p1952_p6 = scmp.lt.s32.totalorder %s1950_s24, %s1943_s16 }
  0x50   : > { %p1946_p11 = pnand %p1944_p10, %p2352_p4 }
  0x51   : > { %p1953_p3 = por %p1952_p6, %p1951_p2 }
  0x52   : > { %p1947_p13 = pneg %p1946_p11 }
  0x54   : > { %p1954_p7 = pnand %p1953_p3, %p1947_p13 }
  0x56   : > { %1957 = shalt.err (!%p1954_p7)
}
  0x57   : > { %1796 = dma.hbm_to_vmem [thread:$0]  (!%p2337_p1), %s2982_s5, 16, %s2341_s19, [#allocation12]  }
  0x58   : > { %s2983_s20 = sadd.s32 1, %s2200_s28  ;;  %p1820_p9 = scmp.lt.s32.totalorder %s2204_s29, 2 }
  0x59   : > { %p44_p8 = scmp.ge.s32.totalorder %s2983_s20, 2  ;;  %s2404_s23 = sand.u32 1, %s2192_s26  }
  0x5a   : > { %s2955_s8 = sshll.u32 %s2200_s28, 11  ;;  %s2984_s15 = smov %s2983_s20 }
  0x5b   : > { %s3021_s15 = smov (%p44_p8, %s2984_s15), 0  ;;  %p2413_p0 = pnand %p1820_p9, %p2306_p5 }
  0x5c   : > { %2985 = sst [smem:[#allocation25_spill]] %s3021_s15  ;;  %s46_s21 = ssub.s32 %s2200_s28, %s3021_s15 }
  0x5d   : > { %s2986_s18 = scalar_select %p2413_p0, 1, 0 }
  0x5e   : > { %p49_p10 = scmp.eq.s32.totalorder %s46_s21, 0  ;;  %s2956_s19 = sand.u32 1, %s2204_s29  }
  0x5f   : > { %s1447_s16 = sshll.u32 %s2404_s23, 7  ;;  %s2987_s24 = sadd.s32 1, %s2192_s26 }
  0x60   : > { %s2424_s7 = scalar_select %p49_p10, %s2192_s26, %s2987_s24  }
  0x61   : > { %s2989_s1 = sld [smem:[#allocation28_spill]]  ;;  %s319_s10 = scalar_lea.vmem [#allocation5], %s1447_s16 }
  0x62   : > { %2988 = sst [smem:[#allocation26_spill]] %s2424_s7  ;;  %s326_s13 = sshll.u32 %s319_s10, 4  ;;  %s2433_s13 = int_to_ptr.vmem [resolvable:$true] %s326_s13 }
  0x63   : > { %s2437_s21 = scalar_lea.sflag [#allocation6], %s2956_s19  ;;  %p2443_p11 = pneg %p2413_p0 }
  0x67   : > { %s2431_s22 = scalar_lea.hbm %s2989_s1, %s2955_s8  ;;  %s1963_s16 = scalar_lea.hbm %s2989_s1, 4096 }
  0x68   : > { %s1958_s4 = scalar_lea.hbm %s2431_s22, 2048  ;;  %p1964_p6 = scmp.lt.u32.totalorder %s2431_s22, %s2989_s1 }
  0x69   : > { %p1959_p5 = scmp.ne.s32.totalorder %s2431_s22, %s1958_s4  ;;  %p1965_p3 = scmp.lt.u32.totalorder %s1963_s16, %s1958_s4 }
  0x6a   : > { %p1967_p8 = scmp.lt.u32.totalorder %s1958_s4, %s2431_s22 }
  0x6b   : > { %p1961_p13 = pnand %p2443_p11, %p1959_p5  ;;  %p1966_p7 = por %p1965_p3, %p1964_p6 }
  0x6d   : > { %p1962_p2 = pneg %p1961_p13  ;;  %p1968_p9 = por %p1967_p8, %p1966_p7 }
  0x6f   : > { %p1969_p10 = pnand %p1968_p9, %p1962_p2 }
  0x71   : > { %1972 = shalt.err (!%p1969_p10)
}
  0x72   : > { %s1973_s19 = scalar_lea.vmem %s2433_s13, 2048  ;;  %s2210_s12 = smov [#allocation5]  }
  0x73   : > { %p1974_p5 = scmp.ne.s32.totalorder %s2433_s13, %s1973_s19  ;;  %s1978_s20 = sshll.u32 %s2210_s12, 4  ;;  %s1979_s20 = int_to_ptr.vmem [resolvable:$false] %s1978_s20 }
  0x74   : > { %s1980_s8 = scalar_lea.vmem %s1979_s20, 4096  ;;  %p1981_p1 = scmp.lt.s32.totalorder %s2433_s13, %s1979_s20 }
  0x75   : > { %p1976_p13 = pnand %p1974_p5, %p2443_p11  ;;  %p1982_p4 = scmp.lt.s32.totalorder %s1980_s8, %s1973_s19 }
  0x77   : > { %p1977_p12 = pneg %p1976_p13  ;;  %p1983_p6 = por %p1982_p4, %p1981_p1 }
  0x79   : > { %p1984_p3 = pnand %p1983_p6, %p1977_p12 }
  0x7b   : > { %1987 = shalt.err (!%p1984_p3)
}
  0x7c   : > { %s2211_s4 = smov 128   ;;  %s2212_s16 = smov 8  }
  0x7d   : > { %1806 = dma.hbm_to_vmem [thread:$0]  (!%p2413_p0), %s2431_s22, 2048, %s2433_s13, %s2437_s21, %s2211_s4, %s2211_s4, %s2212_s16  }
  0x7e   : > { %s2213_s10 = smov [#allocation13]   ;;  %s1444_s20 = sshll.u32 %s2404_s23, 4 }
  0x7f   : > { %s281_s12 = sshll.u32 %s2213_s10, 4  ;;  %s1988_s1 = scalar_lea.hbm %s2943_s6, 16  ;;  %s282_s12 = int_to_ptr.vmem [resolvable:$true] %s281_s12 }
  0x80   : > { %p1989_p12 = scmp.ne.s32.totalorder %s2943_s6, %s1988_s1  ;;  %p2991_p1 = scmp.ne.s32.totalorder %s2981_s9, 0 }
  0x81   : > { %p1995_p7 = scmp.lt.u32.totalorder %s1988_s1, %s2943_s6 }
  0x82   : > { %p1991_p4 = pnand %p1989_p12, %p2991_p1 }
  0x84   : > { %p1992_p2 = pneg %p1991_p4 }
  0x86   : > { %p1997_p8 = pnand %p1995_p7, %p1992_p2 }
  0x88   : > { %2000 = shalt.err (!%p1997_p8)
}
  0x89   : > { %s2001_s22 = scalar_lea.vmem %s282_s12, 16  ;;  %s2008_s13 = scalar_lea.vmem %s282_s12, 32 }
  0x8a   : > { %p2002_p9 = scmp.ne.s32.totalorder %s282_s12, %s2001_s22  ;;  %p2009_p13 = scmp.lt.s32.totalorder %s282_s12, %s282_s12 }
  0x8b   : > { %p2010_p6 = scmp.lt.s32.totalorder %s2008_s13, %s2001_s22 }
  0x8c   : > { %p2004_p10 = pnand %p2002_p9, %p2991_p1 }
  0x8d   : > { %p2011_p3 = por %p2010_p6, %p2009_p13 }
  0x8e   : > { %p2005_p5 = pneg %p2004_p10 }
  0x90   : > { %p2012_p0 = pnand %p2011_p3, %p2005_p5 }
  0x92   : > { %2015 = shalt.err (!%p2012_p0)
}
  0x93   : > { %p2992_p12 = scmp.ne.s32.totalorder %s2979_s17, 0  ;;  %s2993_s1 = sshll.u32 %s2200_s28, 11 }
  0x94   : > { %s2994_s0 = sld [smem:[#allocation27_spill]]  ;;  %s296_s10 = scalar_lea.vmem [#allocation2], %s1444_s20 }
  0x95   : > { %1799 = dma.hbm_to_vmem [thread:$0]  (!%p2992_p12), %s2943_s6, 16, %s282_s12, [#allocation12]  }
  0x96   : > { %s305_s19 = sshll.u32 %s296_s10, 4  ;;  %s293_s17 = scalar_lea.sflag [#allocation3], %s2404_s23  ;;  %s2496_s19 = int_to_ptr.vmem [resolvable:$true] %s305_s19 }
  0x9a   : > { %s2494_s7 = scalar_lea.hbm %s2994_s0, %s2993_s1  ;;  %s2021_s13 = scalar_lea.hbm %s2994_s0, 4096 }
  0x9b   : > { %s2016_s8 = scalar_lea.hbm %s2494_s7, 256  ;;  %p2022_p2 = scmp.lt.u32.totalorder %s2494_s7, %s2994_s0 }
  0x9c   : > { %p2017_p0 = scmp.ne.s32.totalorder %s2494_s7, %s2016_s8  ;;  %p2023_p7 = scmp.lt.u32.totalorder %s2021_s13, %s2016_s8 }
  0x9d   : > { %p2025_p9 = scmp.lt.u32.totalorder %s2016_s8, %s2494_s7 }
  0x9e   : > { %p2019_p1 = pnand %p2017_p0, %p2443_p11  ;;  %p2024_p8 = por %p2023_p7, %p2022_p2 }
  0xa0   : > { %p2020_p4 = pneg %p2019_p1  ;;  %p2026_p10 = por %p2025_p9, %p2024_p8 }
  0xa2   : > { %p2027_p5 = pnand %p2026_p10, %p2020_p4 }
  0xa4   : > { %2030 = shalt.err (!%p2027_p5)
}
  0xa5   : > { %s2031_s20 = scalar_lea.vmem %s2496_s19, 256  ;;  %s2214_s1 = smov [#allocation2]  }
  0xa6   : > { %p2032_p13 = scmp.ne.s32.totalorder %s2496_s19, %s2031_s20  ;;  %s2036_s26 = sshll.u32 %s2214_s1, 4  ;;  %s2037_s26 = int_to_ptr.vmem [resolvable:$false] %s2036_s26 }
  0xa7   : > { %s2038_s9 = scalar_lea.vmem %s2037_s26, 512  ;;  %p2039_p12 = scmp.lt.s32.totalorder %s2496_s19, %s2037_s26 }
  0xa8   : > { %p2034_p6 = pnand %p2032_p13, %p2443_p11  ;;  %p2040_p0 = scmp.lt.s32.totalorder %s2038_s9, %s2031_s20 }
  0xaa   : > { %p2035_p3 = pneg %p2034_p6  ;;  %p2041_p1 = por %p2040_p0, %p2039_p12 }
  0xac   : > { %p2042_p2 = pnand %p2041_p1, %p2035_p3 }
  0xae   : > { %2045 = shalt.err (!%p2042_p2)
}
  0xaf   : > { %p2995_p4 = scmp.ne.s32.totalorder %s2986_s18, 0  ;;  %s1450_s10 = sshll.u32 %s2200_s28, 4 }
  0xb0   : > { %s339_s8 = scalar_lea.vmem [#allocation7], %s2404_s23  ;;  %s344_s5 = scalar_lea.hbm %s2939_s2, %s1450_s10 }
  0xb1   : > { %1803 = dma.hbm_to_vmem [thread:$0]  (!%p2995_p4), %s2494_s7, 256, %s2496_s19, %s293_s17, %s2211_s4, %s2211_s4, %s2212_s16  }
  0xb2   : > { %s346_s12 = sshll.u32 %s339_s8, 4  ;;  %s2046_s15 = scalar_lea.hbm %s344_s5, 16  ;;  %s347_s12 = int_to_ptr.vmem [resolvable:$true] %s346_s12 }
  0xb3   : > { %p2047_p7 = scmp.ne.s32.totalorder %s344_s5, %s2046_s15  ;;  %s2051_s26 = scalar_lea.hbm %s2939_s2, 32 }
  0xb4   : > { %p2052_p10 = scmp.lt.u32.totalorder %s344_s5, %s2939_s2  ;;  %p2053_p5 = scmp.lt.u32.totalorder %s2051_s26, %s2046_s15 }
  0xb5   : > { %p2049_p8 = pnand %p2047_p7, %p2443_p11  ;;  %p2055_p6 = scmp.lt.u32.totalorder %s2046_s15, %s344_s5 }
  0xb6   : > { %p2054_p13 = por %p2053_p5, %p2052_p10 }
  0xb7   : > { %p2050_p9 = pneg %p2049_p8 }
  0xb8   : > { %p2056_p3 = por %p2055_p6, %p2054_p13 }
  0xba   : > { %p2057_p12 = pnand %p2056_p3, %p2050_p9 }
  0xbc   : > { %2060 = shalt.err (!%p2057_p12)
}
  0xbd   : > { %s2061_s4 = scalar_lea.vmem %s347_s12, 16  ;;  %s2215_s16 = smov [#allocation7]  }
  0xbe   : > { %p2062_p0 = scmp.ne.s32.totalorder %s347_s12, %s2061_s4  ;;  %s2066_s7 = sshll.u32 %s2215_s16, 4  ;;  %s2067_s7 = int_to_ptr.vmem [resolvable:$false] %s2066_s7 }
  0xbf   : > { %s2068_s19 = scalar_lea.vmem %s2067_s7, 32  ;;  %p2069_p7 = scmp.lt.s32.totalorder %s347_s12, %s2067_s7 }
  0xc0   : > { %p2064_p1 = pnand %p2062_p0, %p2443_p11  ;;  %p2070_p8 = scmp.lt.s32.totalorder %s2068_s19, %s2061_s4 }
  0xc2   : > { %p2065_p2 = pneg %p2064_p1  ;;  %p2071_p4 = por %p2070_p8, %p2069_p7 }
  0xc4   : > { %p2072_p5 = pnand %p2071_p4, %p2065_p2 }
  0xc6   : > { %2075 = shalt.err (!%p2072_p5)
}
  0xc7   : > { %p2996_p10 = scmp.ne.s32.totalorder %s2986_s18, 0  ;;  %s1451_s0 = sshll.u32 %s2404_s23, 6 }
  0xc8   : > { %s1507_s17 = sshll.u32 %s2200_s28, 10  ;;  %s357_s13 = scalar_lea.vmem [#allocation8], %s1451_s0 }
  0xc9   : > { %1809 = dma.hbm_to_vmem [thread:$0]  (!%p2996_p10), %s344_s5, 16, %s347_s12, %s2437_s21  }
  0xca   : > { %s2548_s22 = scalar_lea.hbm %s2940_s3, %s1507_s17  ;;  %s364_s15 = sshll.u32 %s357_s13, 4  ;;  %s2550_s15 = int_to_ptr.vmem [resolvable:$true] %s364_s15 }
  0xcb   : > { %s2997_s20 = sand.u32 1, %s2204_s29   ;;  %s2076_s26 = scalar_lea.hbm %s2548_s22, 1024 }
  0xcc   : > { %s2554_s1 = scalar_lea.sflag [#allocation9], %s2997_s20  ;;  %p2077_p4 = scmp.ne.s32.totalorder %s2548_s22, %s2076_s26 }
  0xcd   : > { %s2081_s12 = scalar_lea.hbm %s2940_s3, 2048  ;;  %p2082_p6 = scmp.lt.u32.totalorder %s2548_s22, %s2940_s3 }
  0xce   : > { %p2079_p9 = pnand %p2077_p4, %p2443_p11  ;;  %p2083_p3 = scmp.lt.u32.totalorder %s2081_s12, %s2076_s26 }
  0xcf   : > { %p2085_p0 = scmp.lt.u32.totalorder %s2076_s26, %s2548_s22 }
  0xd0   : > { %p2080_p13 = pneg %p2079_p9  ;;  %p2084_p12 = por %p2083_p3, %p2082_p6 }
  0xd2   : > { %p2086_p1 = por %p2085_p0, %p2084_p12 }
  0xd4   : > { %p2087_p2 = pnand %p2086_p1, %p2080_p13 }
  0xd6   : > { %2090 = shalt.err (!%p2087_p2)
}
  0xd7   : > { %s2091_s4 = scalar_lea.vmem %s2550_s15, 1024  ;;  %s2216_s16 = smov [#allocation8]  }
  0xd8   : > { %p2092_p7 = scmp.ne.s32.totalorder %s2550_s15, %s2091_s4  ;;  %s2096_s7 = sshll.u32 %s2216_s16, 4  ;;  %s2097_s7 = int_to_ptr.vmem [resolvable:$false] %s2096_s7 }
  0xd9   : > { %s2098_s19 = scalar_lea.vmem %s2097_s7, 2048  ;;  %p2099_p4 = scmp.lt.s32.totalorder %s2550_s15, %s2097_s7 }
  0xda   : > { %p2094_p8 = pnand %p2092_p7, %p2443_p11  ;;  %p2100_p9 = scmp.lt.s32.totalorder %s2098_s19, %s2091_s4 }
  0xdc   : > { %p2095_p5 = pneg %p2094_p8  ;;  %p2101_p6 = por %p2100_p9, %p2099_p4 }
  0xde   : > { %p2102_p3 = pnand %p2101_p6, %p2095_p5 }
  0xe0   : > { %2105 = shalt.err (!%p2102_p3)
}
  0xe1   : > { %s2998_s0 = smov 4   ;;  %s2999_s17 = smov 64  }
  0xe2   : > { %1812 = dma.hbm_to_vmem [thread:$0]  (!%p2996_p10), %s2548_s22, 1024, %s2550_s15, %s2554_s1, %s2999_s17, %s2999_s17, %s2998_s0  }
  0xe3   : > { %p3000_p11 = scmp.ne.s32.totalorder %s2978_s14, 0 }
  0xe4   : > { %s2584_s24 = sand.u32 (!%p3000_p11), 1, %s2188_s25   ;;  %p3001_p13 = scmp.ne.s32.totalorder (!%p3000_p11), %s2973_s11, 0 }
  0xe5   : > { %376 = sbr.rel (%p3000_p11) target bundleno = 2452 (0x994), region = 48  ;;  %s1455_s10 = sshll.u32 (!%p3000_p11), %s2584_s24, 4 }
  0xe6   : > { %s379_s8 = scalar_lea.sflag (!%p3000_p11), [#allocation3], %s2584_s24  ;;  %s2588_s13 = scalar_lea.vmem (!%p3000_p11), [#allocation2], %s1455_s10 }
  0xec   : > { %2159 = dma.done.wait (%p3001_p13), %s379_s8, 256  }
  0xed   : > { %2161 = vsyncadd (%p3001_p13), %s379_s8, 4294967040  ;;  %s387_s14 = sand.u32 1, %s2295_s30   ;;  %s1456_s18 = sshll.u32 %s2584_s24, 7 }
  0xee   : > { %s388_s22 = scalar_lea.sflag [#allocation6], %s387_s14  ;;  %s2598_s15 = scalar_lea.vmem [#allocation5], %s1456_s18 }
  0xef   : > { %2163 = dma.done.wait (%p3001_p13), %s388_s22, 2064  }
  0xf0   : > { %2165 = vsyncadd (%p3001_p13), %s388_s22, 4294965232  ;;  %s1457_s20 = sshll.u32 %s2584_s24, 6  ;;  %s399_s1 = scalar_lea.vmem [#allocation7], %s2584_s24 }
  0xf1   : > { %s405_s26 = scalar_lea.sflag [#allocation9], %s387_s14  ;;  %s2606_s23 = scalar_lea.vmem [#allocation8], %s1457_s20 }
  0xf2   : > { %2167 = dma.done.wait (%p3001_p13), %s405_s26, 1024  }
  0xf3   : > { %2169 = vsyncadd (%p3001_p13), %s405_s26, 4294966272  ;;  %p3002_p10 = scmp.eq.s32.totalorder %s2295_s30, 0 }
  0xf5   : > { %2171 = dma.done.wait (%p3002_p10), [#allocation9], 1024   ;;  %p3003_p12 = pmov %p3002_p10 }
  0xf6   : > { %p3004_p0 = pmov %p3002_p10 }
  0xf7   : > { %2173 = vsyncadd (%p3003_p12), [#allocation9], 4294966272 }
  0xf8   : > { %2175 = dma.done.wait (%p3004_p0), [#allocation12], 32   ;;  %p3005_p1 = pmov %p3004_p0 }
  0xf9   : > { %v469_v0 = vld [vmem:[%s2598_s15] sm:$0xff]  ;;  %v470_v1 = vld [vmem:[%s2598_s15 + $0x8] sm:$0xff]  ;;  %v471_v2 = vld [vmem:[%s2598_s15 + $0x10] sm:$0xff]  ;;  %v586_v26 = vlaneseq  ;;  %v2217_v49 = vmov 0.0   ;;  %vm2218_vm3 = vmmov 0   ;;  %s2847_s30 = scalar_lea.vmem [#allocation14], %s1456_s18 }
  0xfa   : > { %2177 = vsyncadd (%p3005_p1), [#allocation12], 4294967264  ;;  %v1736_v3 = vpack.c.bf16 %v470_v1, %v469_v0  ;;  %v472_v4 = vld [vmem:[%s2598_s15 + $0x18] sm:$0xff]  ;;  %v473_v6 = vld [vmem:[%s2598_s15 + $0x20] sm:$0xff]  ;;  %1616 = vmatprep.subr.bf16.mxu1 %v2217_v49  ;;  %1632 = vmatprep.mubr.msk.bf16.mxu1 %vm2218_vm3, %v2217_v49  ;;  %s3006_s11 = sld [smem:[#allocation23_spill]]  ;;  %s1508_s21 = sshll.u32 %s2196_s27, 11 }
  0xfb   : > { %v1740_v5 = vpack.c.bf16 %v472_v4, %v471_v2  ;;  %v2626_v7 = vld [vmem:[%s2588_s13] sm:$0xff]  ;;  %v474_v8 = vld [vmem:[%s2598_s15 + $0x28] sm:$0xff]  ;;  %v476_v11 = vld [vmem:[%s2598_s15 + $0x38] sm:$0xff]  ;;  %v587_v27 = vand.u32 127, %v586_v26  ;;  %s1260_s12 = sshll.u32 %s2847_s30, 4  ;;  %s3007_s4 = sld [smem:[#allocation31_spill]]  ;;  %s2886_s12 = int_to_ptr.vmem [resolvable:$true] %s1260_s12 }
  0xfc   : > { %1737 = vmatprep.subr.bf16.mxu0 %v1736_v3  ;;  %1613 = vmatprep.mubr.f32.mxu0 %v2626_v7  ;;  %v1744_v9 = vpack.c.bf16 %v474_v8, %v473_v6  ;;  %v475_v10 = vld [vmem:[%s2598_s15 + $0x30] sm:$0xff]  ;;  %v477_v13 = vld [vmem:[%s2598_s15 + $0x40] sm:$0xff]  ;;  %v478_v14 = vld [vmem:[%s2598_s15 + $0x48] sm:$0xff]  ;;  %s1246_s7 = scalar_lea.sflag [#allocation4], %s2584_s24  ;;  %s2106_s19 = scalar_lea.vmem %s2886_s12, 2048 }
  0xfd   : > { %1739 = vmatpush3.bf16.xpose.msra.mxu0 %v1736_v3  ;;  %v1748_v12 = vpack.c.bf16 %v476_v11, %v475_v10  ;;  %v1752_v15 = vpack.c.bf16 %v478_v14, %v477_v13  ;;  %v479_v16 = vld [vmem:[%s2598_s15 + $0x50] sm:$0xff]  ;;  %v480_v17 = vld [vmem:[%s2598_s15 + $0x58] sm:$0xff]  ;;  %v481_v19 = vld [vmem:[%s2598_s15 + $0x60] sm:$0xff]  ;;  %vm588_vm0 = vcmp.lt.s32.totalorder %v587_v27, 16  ;;  %v603_v38 = vsub.s32 127, %v587_v27  ;;  %p2107_p2 = scmp.ne.s32.totalorder %s2886_s12, %s2106_s19  ;;  %s2221_s27 = smov [#allocation14]  }
  0xfe   : > { %1741 = vmatprep.subr.bf16.mxu0 %v1740_v5  ;;  %v1756_v18 = vpack.c.bf16 %v480_v17, %v479_v16  ;;  %v482_v20 = vld [vmem:[%s2598_s15 + $0x68] sm:$0xff]  ;;  %v483_v22 = vld [vmem:[%s2598_s15 + $0x70] sm:$0xff]  ;;  %v484_v23 = vld [vmem:[%s2598_s15 + $0x78] sm:$0xff]  ;;  %v2219_v27 = vmov 1.0|1.0   ;;  %s2110_s0 = sshll.u32 %s2221_s27, 4  ;;  %s2111_s0 = int_to_ptr.vmem [resolvable:$false] %s2110_s0 }
  0xff   : > { %v1760_v21 = vpack.c.bf16 %v482_v20, %v481_v19  ;;  %v1764_v24 = vpack.c.bf16 %v484_v23, %v483_v22  ;;  %v2641_v25 = vld [vmem:[%s2588_s13 + $0x8] sm:$0xff]  ;;  %v1462_v28 = vld [vmem:[%s399_s1] ss:$0 sm:$0xff]  ;;  %s2112_s17 = scalar_lea.vmem %s2111_s0, 4096  ;;  %p2113_p4 = scmp.lt.s32.totalorder %s2886_s12, %s2111_s0 }
 0x100   : > { %v1886_v48 = vld [vmem:[#allocation10] sm:$0xff]   ;;  %v1887_v50 = vld [vmem:[#allocation10 + $0x8] sm:$0xff]   ;;  %v1888_v52 = vld [vmem:[#allocation10 + $0x10] sm:$0xff]   ;;  %v502_v62 = vpack.c.bf16 %v2641_v25, %v2626_v7  ;;  %p3008_p7 = scmp.ne.s32.totalorder %s3006_s11, 0  ;;  %p2114_p9 = scmp.lt.s32.totalorder %s2112_s17, %s2106_s19 }
 0x101   : > { %1617 = vmatpush3.bf16.msra.mxu1 %v1886_v48  ;;  %v2663_v51 = vld [vmem:[%s2606_s23] sm:$0xff]   ;;  %v2672_v53 = vld [vmem:[%s2606_s23 + $0x8] sm:$0xff]   ;;  %v1889_v54 = vld [vmem:[#allocation10 + $0x18] sm:$0xff]   ;;  %s2884_s16 = scalar_lea.hbm %s3007_s4, %s1508_s21 }
 0x102   : > { %1618 = vmatprep.subr.bf16.mxu1 %v2217_v49  ;;  %v2678_v55 = vld [vmem:[%s2606_s23 + $0x10] sm:$0xff]   ;;  %v1890_v56 = vld [vmem:[#allocation10 + $0x20] sm:$0xff]   ;;  %v2684_v57 = vld [vmem:[%s2606_s23 + $0x18] sm:$0xff]   ;;  %p2108_p8 = pnand %p2107_p2, %p3008_p7  ;;  %p2115_p6 = por %p2114_p9, %p2113_p4 }
 0x103   : > { %v1891_v58 = vld [vmem:[#allocation10 + $0x28] sm:$0xff]   ;;  %v2690_v59 = vld [vmem:[%s2606_s23 + $0x20] sm:$0xff]   ;;  %v1892_v60 = vld [vmem:[#allocation10 + $0x30] sm:$0xff]  }
 0x104   : > { %v1893_v61 = vld [vmem:[#allocation10 + $0x38] sm:$0xff]   ;;  %v2717_v8 = vld [vmem:[%s2606_s23 + $0x28] sm:$0xff]   ;;  %p2109_p5 = pneg %p2108_p8 }
 0x105   : > { %1743 = vmatpush3.bf16.xpose.msra.mxu0 %v1740_v5  ;;  %1619 = vmatpush3.bf16.msra.mxu1 %v1887_v50  ;;  %v2731_v10 = vld [vmem:[%s2606_s23 + $0x38] sm:$0xff]  }
 0x106   : > { %1745 = vmatprep.subr.bf16.mxu0 %v1744_v9  ;;  %1620 = vmatprep.subr.bf16.mxu1 %v2217_v49  ;;  %p2116_p3 = pnand %p2115_p6, %p2109_p5 }
 0x109   : > { %1621 = vmatpush3.bf16.msra.mxu1 %v1888_v52 }
 0x10a   : > { %1622 = vmatprep.subr.bf16.mxu1 %v2217_v49 }
 0x10d   : > { %1747 = vmatpush3.bf16.xpose.msra.mxu0 %v1744_v9  ;;  %1623 = vmatpush3.bf16.msra.mxu1 %v1889_v54  ;;  %v2724_v9 = vld [vmem:[%s2606_s23 + $0x30] sm:$0xff]  }
 0x10e   : > { %1749 = vmatprep.subr.bf16.mxu0 %v1748_v12  ;;  %1624 = vmatprep.subr.bf16.mxu1 %v2217_v49 }
 0x111   : > { %1625 = vmatpush3.bf16.msra.mxu1 %v1890_v56 }
 0x112   : > { %1626 = vmatprep.subr.bf16.mxu1 %v2217_v49 }
 0x115   : > { %1751 = vmatpush3.bf16.xpose.msra.mxu0 %v1748_v12  ;;  %1627 = vmatpush3.bf16.msra.mxu1 %v1891_v58 }
 0x116   : > { %1753 = vmatprep.subr.bf16.mxu0 %v1752_v15  ;;  %1628 = vmatprep.subr.bf16.mxu1 %v2217_v49 }
 0x119   : > { %1629 = vmatpush3.bf16.msra.mxu1 %v1892_v60 }
 0x11a   : > { %1630 = vmatprep.subr.bf16.mxu1 %v2217_v49 }
 0x11d   : > { %1755 = vmatpush3.bf16.xpose.msra.mxu0 %v1752_v15  ;;  %1631 = vmatpush3.bf16.msra.mxu1 %v1893_v61 }
 0x11e   : > { %1757 = vmatprep.subr.bf16.mxu0 %v1756_v18  ;;  %1636 = vmatprep.subr.bf16.mxu1 %v2217_v49 }
 0x120   : > { %1633 = vmatmul.mubr.bf16.vlgmr.msra.gmra.mrb[0].mxu1 %v502_v62 }
 0x121   : > { %1637 = vmatpush3.bf16.msra.mxu1 %v2663_v51  ;;  %1652 = vmatprep.mubr.msk.bf16.mxu1 %vm2218_vm3, %v2217_v49 }
 0x122   : > { %1638 = vmatprep.subr.bf16.mxu1 %v2217_v49 }
 0x125   : > { %1759 = vmatpush3.bf16.xpose.msra.mxu0 %v1756_v18  ;;  %1639 = vmatpush3.bf16.msra.mxu1 %v2672_v53 }
 0x126   : > { %1761 = vmatprep.subr.bf16.mxu0 %v1760_v21  ;;  %1640 = vmatprep.subr.bf16.mxu1 %v2217_v49 }
 0x129   : > { %1641 = vmatpush3.bf16.msra.mxu1 %v2678_v55 }
 0x12a   : > { %1642 = vmatprep.subr.bf16.mxu1 %v2217_v49 }
 0x12d   : > { %1763 = vmatpush3.bf16.xpose.msra.mxu0 %v1760_v21  ;;  %1643 = vmatpush3.bf16.msra.mxu1 %v2684_v57 }
 0x12e   : > { %1765 = vmatprep.subr.bf16.mxu0 %v1764_v24  ;;  %1644 = vmatprep.subr.bf16.mxu1 %v2217_v49 }
 0x131   : > { %1645 = vmatpush3.bf16.msra.mxu1 %v2690_v59 }
 0x132   : > { %1646 = vmatprep.subr.bf16.mxu1 %v2217_v49 }
 0x135   : > { %1767 = vmatpush3.bf16.xpose.msra.mxu0 %v1764_v24  ;;  %1647 = vmatpush3.bf16.msra.mxu1 %v2717_v8 }
 0x136   : > { %1656 = vmatprep.subr.bf16.mxu0 %v2217_v49  ;;  %1648 = vmatprep.subr.bf16.mxu1 %v2217_v49 }
 0x139   : > { %1649 = vmatpush3.bf16.msra.mxu1 %v2724_v9 }
 0x13a   : > { %1650 = vmatprep.subr.bf16.mxu1 %v2217_v49 }
 0x13c   : > { %1614 = vmatmul.mubr.f32.vlgmr.msra.gmra.mrb[0].mxu0 %v2641_v25 }
 0x13d   : > { %1672 = vmatprep.mubr.msk.bf16.mxu0 %vm2218_vm3, %v2217_v49  ;;  %1657 = vmatpush3.bf16.msra.mxu0 %v2663_v51 }
 0x13e   : > { %1658 = vmatprep.subr.bf16.mxu0 %v2217_v49  ;;  %1651 = vmatpush3.bf16.msra.mxu1 %v2731_v10 }
 0x13f   : > { %1676 = vmatprep.subr.bf16.mxu1 %v2217_v49 }
 0x141   : > { %1659 = vmatpush3.bf16.msra.mxu0 %v2672_v53 }
 0x142   : > { %1660 = vmatprep.subr.bf16.mxu0 %v2217_v49 }
 0x145   : > { %1661 = vmatpush3.bf16.msra.mxu0 %v2678_v55 }
 0x146   : > { %1662 = vmatprep.subr.bf16.mxu0 %v2217_v49 }
 0x149   : > { %1663 = vmatpush3.bf16.msra.mxu0 %v2684_v57 }
 0x14a   : > { %1664 = vmatprep.subr.bf16.mxu0 %v2217_v49 }
 0x14d   : > { %1665 = vmatpush3.bf16.msra.mxu0 %v2690_v59 }
 0x14e   : > { %1666 = vmatprep.subr.bf16.mxu0 %v2217_v49 }
 0x151   : > { %1667 = vmatpush3.bf16.msra.mxu0 %v2717_v8 }
 0x152   : > { %1668 = vmatprep.subr.bf16.mxu0 %v2217_v49 }
 0x155   : > { %1669 = vmatpush3.bf16.msra.mxu0 %v2724_v9 }
 0x156   : > { %1670 = vmatprep.subr.bf16.mxu0 %v2217_v49 }
 0x159   : > { %1671 = vmatpush3.bf16.msra.mxu0 %v2731_v10 }
 0x15a   : > { %1696 = vmatprep.subr.bf16.mxu0 %v2217_v49 }
 0x20f   : > { %v1615_v29 = vpop.f32.mrb[0].mxu0 }
 0x210   : > { %v585_v30 = vsub.f32 %v1615_v29, %v1462_v28  ;;  %v569_v31 = vpop.f32.mrb[1].mxu0 }
 0x211   : > { %v584_v32 = vsub.f32 %v569_v31, %v1462_v28 }
 0x212   : > { %v592_v33 = vsel %vm588_vm0, %v585_v30, -1e+30  ;;  %v2757_v30 = vpop.f32.mrb[0].mxu1 }
 0x213   : > { %vm596_vm1 = vcmp.lt.s32.totalorder %v592_v33, 0  ;;  %v598_v34 = vxor.u32 2147483647, %v592_v33  ;;  %v591_v35 = vsel %vm588_vm0, %v584_v32, -1e+30  ;;  %v1634_v31 = vpop.f32.mrb[1].mxu1 }
 0x214   : > { %vm595_vm2 = vcmp.lt.s32.totalorder %v591_v35, 0  ;;  %v597_v36 = vxor.u32 2147483647, %v591_v35  ;;  %v2760_v32 = vpop.f32.mrb[2].mxu1 }
 0x215   : > { %v600_v37 = vsel %vm596_vm1, %v598_v34, %v592_v33  ;;  %v1635_v33 = vpop.f32.mrb[3].mxu1 }
 0x216   : > { %v602_v39 = vand.u32 4294967168, %v600_v37  ;;  %v599_v40 = vsel %vm595_vm2, %v597_v36, %v591_v35 }
 0x217   : > { %v601_v41 = vand.u32 4294967168, %v599_v40 }
 0x218   : > { %v2647_v42 = vor.u32 %v603_v38, %v602_v39 }
 0x219   : > { %v2649_v43 = vor.u32 %v603_v38, %v601_v41 }
 0x21a   : > { %v726_v46 = vshra.s32 %v2647_v42, 16  ;;  %v725_v2 = vand.u32 65535, %v2647_v42 }
 0x21b   : > { %v712_v44 = vshra.s32 %v2649_v43, 16  ;;  %v711_v63 = vand.u32 65535, %v2649_v43 }
 0x21c   : > { %v2656_v47 = vcvt.s32.f32 %v726_v46  ;;  %v727_v5 = vcvt.s32.f32 %v725_v2 }
 0x21d   : > { %v2652_v45 = vcvt.s32.f32 %v712_v44  ;;  %v713_v1 = vcvt.s32.f32 %v711_v63 }
 0x21f   : > { %715 = vmax.xlane.f32.xlu0 %v2652_v45 }
 0x223   : > { %729 = vmax.xlane.f32.xlu0 %v2656_v47 }
 0x2ac   : > { %v716_v0 = vpop.xlane.xlu0 %715 }
 0x2ad   : > { %vm717_vm4 = vcmp.eq.f32.partialorder %v2652_v45, %v716_v0  ;;  %v722_v11 = vcvt.f32.s32 %v716_v0 }
 0x2ae   : > { %v718_v3 = vsel %vm717_vm4, %v713_v1, -inf }
 0x2af   : > { %719 = vmax.xlane.f32.xlu1 %v718_v3  ;;  %v723_v13 = vshll.u32 %v722_v11, 16 }
 0x2b0   : > { %v730_v4 = vpop.xlane.xlu0 %729 }
 0x2b1   : > { %vm731_vm5 = vcmp.eq.f32.partialorder %v2656_v47, %v730_v4  ;;  %v736_v14 = vcvt.f32.s32 %v730_v4 }
 0x2b2   : > { %v732_v6 = vsel %vm731_vm5, %v727_v5, -inf }
 0x2b3   : > { %733 = vmax.xlane.f32.xlu1 %v732_v6  ;;  %v737_v18 = vshll.u32 %v736_v14, 16 }
 0x33c   : > { %v720_v12 = vpop.xlane.xlu1 %719 }
 0x33d   : > { %v721_v15 = vcvt.f32.s32 %v720_v12 }
 0x33f   : > { %v724_v16 = vadd.s32 %v723_v13, %v721_v15 }
 0x340   : > { %v734_v17 = vpop.xlane.xlu1 %733 }
 0x341   : > { %vm739_vm6 = vcmp.eq.s32.totalorder %v2649_v43, %v724_v16  ;;  %v735_v19 = vcvt.f32.s32 %v734_v17 }
 0x342   : > { %v2739_v20 = vsel %vm739_vm6, 2147483648, %v2649_v43 }
 0x343   : > { %v738_v21 = vadd.s32 %v737_v18, %v735_v19  ;;  %v838_v22 = vshra.s32 %v2739_v20, 16  ;;  %v837_v34 = vand.u32 65535, %v2739_v20 }
 0x345   : > { %vm740_vm7 = vcmp.eq.s32.totalorder %v2647_v42, %v738_v21  ;;  %v840_v23 = vcvt.s32.f32 %v838_v22  ;;  %v839_v36 = vcvt.s32.f32 %v837_v34 }
 0x346   : > { %vm1481_vm8 = vmpackc.low %vm740_vm7, %vm739_vm6  ;;  %v836_v24 = vsel %vm740_vm7, 2147483648, %v2647_v42 }
 0x347   : > { %841 = vmax.xlane.f32.xlu0 %v840_v23  ;;  %1653 = vmatmul.mubr.msk.bf16.vlgmr.msra.gmra.mrb[4].mxu1 %vm1481_vm8, %v2219_v27  ;;  %v852_v28 = vshra.s32 %v836_v24, 16  ;;  %v851_v37 = vand.u32 65535, %v836_v24 }
 0x348   : > { %1677 = vmatpush3.bf16.msra.mxu1 %v2663_v51  ;;  %1692 = vmatprep.mubr.msk.bf16.mxu1 %vm2218_vm3, %v2217_v49 }
 0x349   : > { %v854_v29 = vcvt.s32.f32 %v852_v28  ;;  %1678 = vmatprep.subr.bf16.mxu1 %v2217_v49  ;;  %v853_v40 = vcvt.s32.f32 %v851_v37 }
 0x34b   : > { %855 = vmax.xlane.f32.xlu1 %v854_v29 }
 0x34c   : > { %1679 = vmatpush3.bf16.msra.mxu1 %v2672_v53 }
 0x34d   : > { %1680 = vmatprep.subr.bf16.mxu1 %v2217_v49 }
 0x350   : > { %1681 = vmatpush3.bf16.msra.mxu1 %v2678_v55 }
 0x351   : > { %1682 = vmatprep.subr.bf16.mxu1 %v2217_v49 }
 0x354   : > { %1683 = vmatpush3.bf16.msra.mxu1 %v2684_v57 }
 0x355   : > { %1684 = vmatprep.subr.bf16.mxu1 %v2217_v49 }
 0x358   : > { %1685 = vmatpush3.bf16.msra.mxu1 %v2690_v59 }
 0x359   : > { %1686 = vmatprep.subr.bf16.mxu1 %v2217_v49 }
 0x35c   : > { %1687 = vmatpush3.bf16.msra.mxu1 %v2717_v8 }
 0x35d   : > { %1688 = vmatprep.subr.bf16.mxu1 %v2217_v49 }
 0x360   : > { %1689 = vmatpush3.bf16.msra.mxu1 %v2724_v9 }
 0x361   : > { %1690 = vmatprep.subr.bf16.mxu1 %v2217_v49 }
 0x364   : > { %1691 = vmatpush3.bf16.msra.mxu1 %v2731_v10 }
 0x365   : > { %1716 = vmatprep.subr.bf16.mxu1 %v2217_v49 }
 0x3d4   : > { %v842_v35 = vpop.xlane.xlu0 %841 }
 0x3d5   : > { %vm843_vm9 = vcmp.eq.f32.partialorder %v840_v23, %v842_v35  ;;  %v848_v46 = vcvt.f32.s32 %v842_v35 }
 0x3d6   : > { %v844_v38 = vsel %vm843_vm9, %v839_v36, -inf }
 0x3d7   : > { %845 = vmax.xlane.f32.xlu0 %v844_v38  ;;  %v849_v48 = vshll.u32 %v848_v46, 16 }
 0x3d8   : > { %v856_v39 = vpop.xlane.xlu1 %855 }
 0x3d9   : > { %vm857_vm10 = vcmp.eq.f32.partialorder %v854_v29, %v856_v39  ;;  %v862_v50 = vcvt.f32.s32 %v856_v39 }
 0x3da   : > { %v858_v41 = vsel %vm857_vm10, %v853_v40, -inf }
 0x3db   : > { %859 = vmax.xlane.f32.xlu1 %v858_v41  ;;  %v863_v58 = vshll.u32 %v862_v50, 16 }
 0x41a   : > { %v2768_v42 = vpop.f32.mrb[4].mxu1 }
 0x41b   : > { %v1654_v43 = vpop.f32.mrb[5].mxu1 }
 0x41c   : > { %v2770_v44 = vpop.f32.mrb[6].mxu1 }
 0x41d   : > { %v1655_v45 = vpop.f32.mrb[7].mxu1 }
 0x464   : > { %v846_v47 = vpop.xlane.xlu0 %845 }
 0x465   : > { %v847_v52 = vcvt.f32.s32 %v846_v47 }
 0x467   : > { %v850_v54 = vadd.s32 %v849_v48, %v847_v52 }
 0x468   : > { %v860_v56 = vpop.xlane.xlu1 %859 }
 0x469   : > { %vm865_vm11 = vcmp.eq.s32.totalorder %v2739_v20, %v850_v54  ;;  %v861_v60 = vcvt.f32.s32 %v860_v56 }
 0x46a   : > { %v2774_v61 = vsel %vm865_vm11, 2147483648, %v2739_v20 }
 0x46b   : > { %v864_v62 = vadd.s32 %v863_v58, %v861_v60  ;;  %v920_v63 = vshra.s32 %v2774_v61, 16  ;;  %v919_v4 = vand.u32 65535, %v2774_v61 }
 0x46d   : > { %vm866_vm12 = vcmp.eq.s32.totalorder %v836_v24, %v864_v62  ;;  %v922_v0 = vcvt.s32.f32 %v920_v63  ;;  %v921_v6 = vcvt.s32.f32 %v919_v4 }
 0x46e   : > { %vm1485_vm13 = vmpackc.low %vm866_vm12, %vm865_vm11  ;;  %v918_v1 = vsel %vm866_vm12, 2147483648, %v836_v24 }
 0x46f   : > { %923 = vmax.xlane.f32.xlu0 %v922_v0  ;;  %1673 = vmatmul.mubr.msk.bf16.vlgmr.msra.gmra.mrb[4].mxu0 %vm1485_vm13, %v2219_v27  ;;  %v934_v2 = vshra.s32 %v918_v1, 16  ;;  %v933_v11 = vand.u32 65535, %v918_v1 }
 0x470   : > { %1697 = vmatpush3.bf16.msra.mxu0 %v2663_v51  ;;  %1712 = vmatprep.mubr.msk.bf16.mxu0 %vm2218_vm3, %v2217_v49 }
 0x471   : > { %v936_v3 = vcvt.s32.f32 %v934_v2  ;;  %1698 = vmatprep.subr.bf16.mxu0 %v2217_v49  ;;  %v935_v14 = vcvt.s32.f32 %v933_v11 }
 0x473   : > { %937 = vmax.xlane.f32.xlu1 %v936_v3 }
 0x474   : > { %1699 = vmatpush3.bf16.msra.mxu0 %v2672_v53 }
 0x475   : > { %1700 = vmatprep.subr.bf16.mxu0 %v2217_v49 }
 0x478   : > { %1701 = vmatpush3.bf16.msra.mxu0 %v2678_v55 }
 0x479   : > { %1702 = vmatprep.subr.bf16.mxu0 %v2217_v49 }
 0x47c   : > { %1703 = vmatpush3.bf16.msra.mxu0 %v2684_v57 }
 0x47d   : > { %1704 = vmatprep.subr.bf16.mxu0 %v2217_v49 }
 0x480   : > { %1705 = vmatpush3.bf16.msra.mxu0 %v2690_v59 }
 0x481   : > { %1706 = vmatprep.subr.bf16.mxu0 %v2217_v49 }
 0x484   : > { %1707 = vmatpush3.bf16.msra.mxu0 %v2717_v8 }
 0x485   : > { %1708 = vmatprep.subr.bf16.mxu0 %v2217_v49 }
 0x488   : > { %1709 = vmatpush3.bf16.msra.mxu0 %v2724_v9 }
 0x489   : > { %1710 = vmatprep.subr.bf16.mxu0 %v2217_v49 }
 0x48c   : > { %1711 = vmatpush3.bf16.msra.mxu0 %v2731_v10 }
 0x4fc   : > { %v924_v5 = vpop.xlane.xlu0 %923 }
 0x4fd   : > { %vm925_vm14 = vcmp.eq.f32.partialorder %v922_v0, %v924_v5  ;;  %v930_v24 = vcvt.f32.s32 %v924_v5 }
 0x4fe   : > { %v926_v12 = vsel %vm925_vm14, %v921_v6, -inf }
 0x4ff   : > { %927 = vmax.xlane.f32.xlu0 %v926_v12  ;;  %v931_v29 = vshll.u32 %v930_v24, 16 }
 0x500   : > { %v938_v13 = vpop.xlane.xlu1 %937 }
 0x501   : > { %vm939_vm15 = vcmp.eq.f32.partialorder %v936_v3, %v938_v13  ;;  %v944_v31 = vcvt.f32.s32 %v938_v13 }
 0x502   : > { %v940_v15 = vsel %vm939_vm15, %v935_v14, -inf  ;;  %vm1228_vm15 = vcmask 130048  }
 0x503   : > { %941 = vmax.xlane.f32.xlu1 %v940_v15  ;;  %v945_v36 = vshll.u32 %v944_v31, 16 }
 0x542   : > { %v906_v16 = vpop.f32.mrb[4].mxu0 }
 0x543   : > { %v913_v17 = vmax.f32 %v2768_v42, %v906_v16  ;;  %v915_v18 = vmin.f32 %v2768_v42, %v906_v16  ;;  %v1674_v19 = vpop.f32.mrb[5].mxu0 }
 0x544   : > { %v909_v20 = vpop.f32.mrb[6].mxu0 }
 0x545   : > { %v914_v21 = vmax.f32 %v2770_v44, %v909_v20  ;;  %v916_v22 = vmin.f32 %v2770_v44, %v909_v20  ;;  %v1675_v23 = vpop.f32.mrb[7].mxu0 }
 0x58c   : > { %v928_v28 = vpop.xlane.xlu0 %927 }
 0x58d   : > { %v929_v33 = vcvt.f32.s32 %v928_v28 }
 0x58f   : > { %v932_v34 = vadd.s32 %v931_v29, %v929_v33 }
 0x590   : > { %v942_v35 = vpop.xlane.xlu1 %941 }
 0x591   : > { %vm947_vm0 = vcmp.eq.s32.totalorder %v2774_v61, %v932_v34  ;;  %v943_v37 = vcvt.f32.s32 %v942_v35 }
 0x592   : > { %v2802_v38 = vsel %vm947_vm0, 2147483648, %v2774_v61 }
 0x593   : > { %v946_v39 = vadd.s32 %v945_v36, %v943_v37  ;;  %v1002_v40 = vshra.s32 %v2802_v38, 16 }
 0x595   : > { %vm948_vm1 = vcmp.eq.s32.totalorder %v918_v1, %v946_v39  ;;  %v1004_v41 = vcvt.s32.f32 %v1002_v40 }
 0x596   : > { %vm1489_vm2 = vmpackc.low %vm948_vm1, %vm947_vm0  ;;  %v1000_v42 = vsel %vm948_vm1, 2147483648, %v918_v1 }
 0x597   : > { %1005 = vmax.xlane.f32.xlu0 %v1004_v41  ;;  %1693 = vmatmul.mubr.msk.bf16.vlgmr.msra.gmra.mrb[8].mxu1 %vm1489_vm2, %v2219_v27  ;;  %v1016_v43 = vshra.s32 %v1000_v42, 16 }
 0x598   : > { %1717 = vmatpush3.bf16.msra.mxu1 %v2663_v51  ;;  %1732 = vmatprep.mubr.msk.bf16.mxu1 %vm2218_vm3, %v2217_v49  ;;  %v1001_v51 = vand.u32 65535, %v2802_v38 }
 0x599   : > { %v1018_v44 = vcvt.s32.f32 %v1016_v43  ;;  %1718 = vmatprep.subr.bf16.mxu1 %v2217_v49 }
 0x59b   : > { %1019 = vmax.xlane.f32.xlu1 %v1018_v44 }
 0x59c   : > { %1719 = vmatpush3.bf16.msra.mxu1 %v2672_v53 }
 0x59d   : > { %1720 = vmatprep.subr.bf16.mxu1 %v2217_v49 }
 0x5a0   : > { %1721 = vmatpush3.bf16.msra.mxu1 %v2678_v55  ;;  %v1003_v55 = vcvt.s32.f32 %v1001_v51  ;;  %v1163_v51 = vld [vmem:[#allocation11] sm:$0x1] }
 0x5a1   : > { %1722 = vmatprep.subr.bf16.mxu1 %v2217_v49  ;;  %vm1165_vm13 = vcmp.ge.f32.partialorder %v1163_v51, 0.0 }
 0x5a4   : > { %1723 = vmatpush3.bf16.msra.mxu1 %v2684_v57  ;;  %v1015_v57 = vand.u32 65535, %v1000_v42 }
 0x5a5   : > { %1724 = vmatprep.subr.bf16.mxu1 %v2217_v49 }
 0x5a6   : > { %v1017_v46 = vcvt.s32.f32 %v1015_v57  ;;  %v2220_v57 = vmov 0  }
 0x5a8   : > { %1725 = vmatpush3.bf16.msra.mxu1 %v2690_v59 }
 0x5a9   : > { %1726 = vmatprep.subr.bf16.mxu1 %v2217_v49 }
 0x5ac   : > { %1727 = vmatpush3.bf16.msra.mxu1 %v2717_v8 }
 0x5ad   : > { %1728 = vmatprep.subr.bf16.mxu1 %v2217_v49 }
 0x5b0   : > { %1729 = vmatpush3.bf16.msra.mxu1 %v2724_v9 }
 0x5b1   : > { %1730 = vmatprep.subr.bf16.mxu1 %v2217_v49 }
 0x5b4   : > { %1731 = vmatpush3.bf16.msra.mxu1 %v2731_v10 }
 0x624   : > { %v1006_v53 = vpop.xlane.xlu0 %1005 }
 0x625   : > { %vm1007_vm3 = vcmp.eq.f32.partialorder %v1004_v41, %v1006_v53  ;;  %v1012_v56 = vcvt.f32.s32 %v1006_v53  ;;  %v1168_v53 = vshrl.u32 %v586_v26, 7 }
 0x626   : > { %v1008_v45 = vsel %vm1007_vm3, %v1003_v55, -inf }
 0x627   : > { %1009 = vmax.xlane.f32.xlu0 %v1008_v45  ;;  %v1013_v60 = vshll.u32 %v1012_v56, 16  ;;  %v1169_v55 = vsub.s32 0, %v1168_v53  ;;  %v1166_v45 = vsel %vm1165_vm13, 1, %v2220_v57  ;;  %v1499_v56 = vld [vmem:[#allocation13] ss:$0 sm:$0xff] }
 0x628   : > { %v1020_v59 = vpop.xlane.xlu1 %1019 }
 0x629   : > { %vm1021_vm4 = vcmp.eq.f32.partialorder %v1018_v44, %v1020_v59  ;;  %v1026_v61 = vcvt.f32.s32 %v1020_v59  ;;  %v1170_v59 = vrot.slane %v1166_v45, %v1169_v55 }
 0x62a   : > { %v1022_v8 = vsel %vm1021_vm4, %v1017_v46, -inf }
 0x62b   : > { %1023 = vmax.xlane.f32.xlu1 %v1022_v8  ;;  %v1027_v1 = vshll.u32 %v1026_v61, 16  ;;  %vm1171_vm14 = vcmp.eq.s32.totalorder %v1170_v59, 1 }
 0x66a   : > { %v988_v47 = vpop.f32.mrb[8].mxu1 }
 0x66b   : > { %v2824_v48 = vmax.f32 %v913_v17, %v988_v47  ;;  %v2826_v9 = vmin.f32 %v915_v18, %v988_v47  ;;  %v1694_v49 = vpop.f32.mrb[9].mxu1 }
 0x66c   : > { %v991_v10 = vpop.f32.mrb[10].mxu1  ;;  %v1180_v49 = vrot.slane %v1163_v51, %v1169_v55 }
 0x66d   : > { %v2828_v50 = vmax.f32 %v914_v21, %v991_v10  ;;  %v2830_v52 = vmin.f32 %v916_v22, %v991_v10  ;;  %v1695_v54 = vpop.f32.mrb[11].mxu1 }
 0x6b4   : > { %v1010_v58 = vpop.xlane.xlu0 %1009 }
 0x6b5   : > { %v1011_v62 = vcvt.f32.s32 %v1010_v58 }
 0x6b7   : > { %v1014_v63 = vadd.s32 %v1013_v60, %v1011_v62 }
 0x6b8   : > { %v1024_v0 = vpop.xlane.xlu1 %1023 }
 0x6b9   : > { %vm1029_vm5 = vcmp.eq.s32.totalorder %v2802_v38, %v1014_v63  ;;  %v1025_v2 = vcvt.f32.s32 %v1024_v0 }
 0x6ba   : > { %v1081_v3 = vsel %vm1029_vm5, 2147483648, %v2802_v38 }
 0x6bb   : > { %v1028_v4 = vadd.s32 %v1027_v1, %v1025_v2  ;;  %v1084_v5 = vshra.s32 %v1081_v3, 16  ;;  %v1083_v14 = vand.u32 65535, %v1081_v3 }
 0x6bd   : > { %vm1030_vm6 = vcmp.eq.s32.totalorder %v1000_v42, %v1028_v4  ;;  %v1086_v6 = vcvt.s32.f32 %v1084_v5  ;;  %v1085_v16 = vcvt.s32.f32 %v1083_v14 }
 0x6be   : > { %vm1493_vm7 = vmpackc.low %vm1030_vm6, %vm1029_vm5  ;;  %v1082_v11 = vsel %vm1030_vm6, 2147483648, %v1000_v42 }
 0x6bf   : > { %1087 = vmax.xlane.f32.xlu0 %v1086_v6  ;;  %1713 = vmatmul.mubr.msk.bf16.vlgmr.msra.gmra.mrb[8].mxu0 %vm1493_vm7, %v2219_v27  ;;  %v1098_v12 = vshra.s32 %v1082_v11, 16  ;;  %v1097_v17 = vand.u32 65535, %v1082_v11 }
 0x6c1   : > { %v1100_v13 = vcvt.s32.f32 %v1098_v12  ;;  %v1099_v20 = vcvt.s32.f32 %v1097_v17 }
 0x6c3   : > { %1101 = vmax.xlane.f32.xlu1 %v1100_v13 }
 0x74c   : > { %v1088_v15 = vpop.xlane.xlu0 %1087 }
 0x74d   : > { %vm1089_vm8 = vcmp.eq.f32.partialorder %v1086_v6, %v1088_v15  ;;  %v1094_v35 = vcvt.f32.s32 %v1088_v15 }
 0x74e   : > { %v1090_v18 = vsel %vm1089_vm8, %v1085_v16, -inf }
 0x74f   : > { %1091 = vmax.xlane.f32.xlu0 %v1090_v18  ;;  %v1095_v39 = vshll.u32 %v1094_v35, 16 }
 0x750   : > { %v1102_v19 = vpop.xlane.xlu1 %1101 }
 0x751   : > { %vm1103_vm9 = vcmp.eq.f32.partialorder %v1100_v13, %v1102_v19  ;;  %v1108_v37 = vcvt.f32.s32 %v1102_v19 }
 0x752   : > { %v1104_v21 = vsel %vm1103_vm9, %v1099_v20, -inf }
 0x753   : > { %1105 = vmax.xlane.f32.xlu1 %v1104_v21  ;;  %v1109_v41 = vshll.u32 %v1108_v37, 16 }
 0x792   : > { %v1070_v22 = vpop.f32.mrb[8].mxu0 }
 0x793   : > { %v1077_v23 = vmax.f32 %v2824_v48, %v1070_v22  ;;  %v1079_v24 = vmin.f32 %v2826_v9, %v1070_v22  ;;  %v1714_v28 = vpop.f32.mrb[9].mxu0 }
 0x794   : > { %v1073_v29 = vpop.f32.mrb[10].mxu0 }
 0x795   : > { %v1078_v31 = vmax.f32 %v2828_v50, %v1073_v29  ;;  %v1080_v33 = vmin.f32 %v2830_v52, %v1073_v29  ;;  %v1715_v34 = vpop.f32.mrb[11].mxu0 }
 0x7dc   : > { %v1092_v36 = vpop.xlane.xlu0 %1091 }
 0x7dd   : > { %v1093_v38 = vcvt.f32.s32 %v1092_v36 }
 0x7df   : > { %v1096_v42 = vadd.s32 %v1095_v39, %v1093_v38 }
 0x7e0   : > { %v1106_v40 = vpop.xlane.xlu1 %1105 }
 0x7e1   : > { %v1107_v43 = vcvt.f32.s32 %v1106_v40  ;;  %vm1111_vm10 = vcmp.eq.s32.totalorder %v1081_v3, %v1096_v42 }
 0x7e3   : > { %v1110_v44 = vadd.s32 %v1109_v41, %v1107_v43 }
 0x7e5   : > { %vm1112_vm11 = vcmp.eq.s32.totalorder %v1082_v11, %v1110_v44 }
 0x7e6   : > { %vm1497_vm12 = vmpackc.low %vm1112_vm11, %vm1111_vm10 }
 0x7e7   : > { %1733 = vmatmul.mubr.msk.bf16.vlgmr.msra.gmra.mrb[12].mxu1 %vm1497_vm12, %v2219_v27 }
 0x8ba   : > { %v1152_v46 = vpop.f32.mrb[12].mxu1 }
 0x8bb   : > { %v1159_v8 = vmax.f32 %v1077_v23, %v1152_v46  ;;  %v1161_v47 = vmin.f32 %v1079_v24, %v1152_v46  ;;  %v1734_v48 = vpop.f32.mrb[13].mxu1 }
 0x8bc   : > { %v1155_v9 = vpop.f32.mrb[14].mxu1 }
 0x8bd   : > { %v1172_v10 = vsel %vm1171_vm14, %v1159_v8, %v1161_v47  ;;  %v1160_v50 = vmax.f32 %v1078_v31, %v1155_v9  ;;  %v1162_v52 = vmin.f32 %v1080_v33, %v1155_v9  ;;  %v1735_v54 = vpop.f32.mrb[15].mxu1 }
 0x8be   : > { %v1174_v27 = vadd.f32 %v1172_v10, %v2757_v30 }
 0x8bf   : > { %v1173_v26 = vsel %vm1171_vm14, %v1160_v50, %v1162_v52 }
 0x8c0   : > { %v1175_v58 = vadd.f32 %v1173_v26, %v2760_v32  ;;  %v1182_v60 = vmul.f32 %v1180_v49, %v1174_v27 }
 0x8c2   : > { %v1190_v61 = vadd.f32 %v1499_v56, %v1182_v60  ;;  %v1183_v62 = vmul.f32 %v1180_v49, %v1175_v58 }
 0x8c4   : > { %v1192_v63 = vmax.f32 %v1190_v61, 0.0  ;;  %v1191_v0 = vadd.f32 %v1499_v56, %v1183_v62 }
 0x8c6   : > { %v1194_v1 = vadd.f32 %v1192_v63, %v2626_v7  ;;  %v1193_v2 = vmax.f32 %v1191_v0, 0.0 }
 0x8c8   : > { %1196 = vxpose.xlu0.b32.start [1/2] (short) %v1194_v1, 128  ;;  %v1195_v3 = vadd.f32 %v1193_v2, %v2641_v25 }
 0x8cc   : > { %1197 = vxpose.xlu0.b32.end [2/2] (short) %v1195_v3, 128 }
 0x948   : > { %v1212_v4 = vpop.trf.xlu0 }
 0x949   : > { %1229 = vst.msk [vmem:[%s2847_s30] sm:$0xff] %vm1228_vm15, %v1212_v4 }
 0x94c   : > { %v1213_v7 = vpop.trf.xlu0 }
 0x94d   : > { %1230 = vst.msk [vmem:[%s2847_s30 + $0x8] sm:$0xff] %vm1228_vm15, %v1213_v7 }
 0x950   : > { %v1214_v25 = vpop.trf.xlu0 }
 0x951   : > { %1231 = vst.msk [vmem:[%s2847_s30 + $0x10] sm:$0xff] %vm1228_vm15, %v1214_v25 }
 0x954   : > { %v1215_v30 = vpop.trf.xlu0 }
 0x955   : > { %1232 = vst.msk [vmem:[%s2847_s30 + $0x18] sm:$0xff] %vm1228_vm15, %v1215_v30 }
 0x958   : > { %v1216_v32 = vpop.trf.xlu0 }
 0x959   : > { %1233 = vst.msk [vmem:[%s2847_s30 + $0x20] sm:$0xff] %vm1228_vm15, %v1216_v32 }
 0x95c   : > { %v1217_v5 = vpop.trf.xlu0 }
 0x95d   : > { %1234 = vst.msk [vmem:[%s2847_s30 + $0x28] sm:$0xff] %vm1228_vm15, %v1217_v5 }
 0x960   : > { %v1218_v6 = vpop.trf.xlu0 }
 0x961   : > { %1235 = vst.msk [vmem:[%s2847_s30 + $0x30] sm:$0xff] %vm1228_vm15, %v1218_v6 }
 0x964   : > { %v1219_v11 = vpop.trf.xlu0 }
 0x965   : > { %1236 = vst.msk [vmem:[%s2847_s30 + $0x38] sm:$0xff] %vm1228_vm15, %v1219_v11 }
 0x968   : > { %v1220_v12 = vpop.trf.xlu0 }
 0x969   : > { %1237 = vst.msk [vmem:[%s2847_s30 + $0x40] sm:$0xff] %vm1228_vm15, %v1220_v12 }
 0x96c   : > { %v1221_v13 = vpop.trf.xlu0 }
 0x96d   : > { %1238 = vst.msk [vmem:[%s2847_s30 + $0x48] sm:$0xff] %vm1228_vm15, %v1221_v13 }
 0x970   : > { %v1222_v14 = vpop.trf.xlu0 }
 0x971   : > { %1239 = vst.msk [vmem:[%s2847_s30 + $0x50] sm:$0xff] %vm1228_vm15, %v1222_v14 }
 0x974   : > { %v1223_v15 = vpop.trf.xlu0 }
 0x975   : > { %1240 = vst.msk [vmem:[%s2847_s30 + $0x58] sm:$0xff] %vm1228_vm15, %v1223_v15 }
 0x978   : > { %v1224_v16 = vpop.trf.xlu0 }
 0x979   : > { %1241 = vst.msk [vmem:[%s2847_s30 + $0x60] sm:$0xff] %vm1228_vm15, %v1224_v16 }
 0x97c   : > { %v1225_v17 = vpop.trf.xlu0 }
 0x97d   : > { %1242 = vst.msk [vmem:[%s2847_s30 + $0x68] sm:$0xff] %vm1228_vm15, %v1225_v17 }
 0x980   : > { %v1226_v18 = vpop.trf.xlu0 }
 0x981   : > { %1243 = vst.msk [vmem:[%s2847_s30 + $0x70] sm:$0xff] %vm1228_vm15, %v1226_v18 }
 0x984   : > { %v1227_v19 = vpop.trf.xlu0 }
 0x985   : > { %1244 = vst.msk [vmem:[%s2847_s30 + $0x78] sm:$0xff] %vm1228_vm15, %v1227_v19 }
 0x986   : > { %2119 = shalt.err (!%p2116_p3)
}
 0x987   : > { %s2120_s10 = scalar_lea.hbm %s2884_s16, 2048  ;;  %s2124_s14 = scalar_lea.hbm %s3007_s4, 4096 }
 0x988   : > { %p2121_p11 = scmp.ne.s32.totalorder %s2884_s16, %s2120_s10  ;;  %p2125_p12 = scmp.lt.u32.totalorder %s2884_s16, %s3007_s4 }
 0x989   : > { %p2126_p0 = scmp.lt.u32.totalorder %s2124_s14, %s2120_s10  ;;  %p2128_p2 = scmp.lt.u32.totalorder %s2120_s10, %s2884_s16 }
 0x98a   : > { %p2122_p13 = pnand %p2121_p11, %p3008_p7 }
 0x98b   : > { %p2127_p1 = por %p2126_p0, %p2125_p12 }
 0x98c   : > { %p2123_p10 = pneg %p2122_p13 }
 0x98d   : > { %p2129_p8 = por %p2128_p2, %p2127_p1 }
 0x98f   : > { %p2130_p5 = pnand %p2129_p8, %p2123_p10 }
 0x991   : > { %2133 = shalt.err (!%p2130_p5)
}
 0x992   : > { %s2222_s15 = smov 128   ;;  %s2223_s20 = smov 8  }
 0x993   : > { %1788 = dma.vmem_to_hbm [thread:$0]  (%p3008_p7), %s2886_s12, 2048, %s2884_s16, %s1246_s7, %s2222_s15, %s2222_s15, %s2223_s20  }
 0x994 PF: > { %s3009_s1 = sld [smem:[#allocation21_spill]]  ;;  %s3010_s26 = sld [smem:[#allocation24_spill]] }
 0x995   : > { %p3012_p9 = scmp.ge.s32.totalorder %s2204_s29, 2 }
 0x99a   : > { %s1275_s23 = sand.u32 1, %s3009_s1   ;;  %p3011_p4 = scmp.ne.s32.totalorder %s3010_s26, 0 }
 0x99b   : > { %s1276_s30 = scalar_lea.sflag [#allocation4], %s1275_s23 }
 0x99c   : > { %p1814_p6 = pnand %p3012_p9, %p3011_p4 }
 0x99e   : > { %2179 = dma.done.wait (!%p1814_p6), %s1276_s30, 2048  }
 0x99f   : > { %2181 = vsyncadd (!%p1814_p6), %s1276_s30, 4294965248  ;;  %s30_s29 = sadd.s32 1, %s2204_s29   ;;  %s3013_s21 = sld [smem:[#allocation22_spill]] }
 0x9a0   : > { %p27_p3 = scmp.ge.s32.totalorder %s30_s29, 4   ;;  %s3014_s26 = sld [smem:[#allocation26_spill]] }
 0x9a1   : > { %s3015_s11 = sld [smem:[#allocation25_spill]]  ;;  %s3016_s24 = smov %s2188_s25 }
 0x9a2   : > { %s3018_s27 = smov %s2200_s28  ;;  %29 = sbr.rel (!%p27_p3) target bundleno = 17 (0x11), region = 142 }
 0x9a5   : > { %s3017_s25 = smov %s3013_s21 }
 0x9a7   : > { %s3019_s28 = smov %s3015_s11 }
 0x9a9   :  { %1281 = vsyncpa [#allocation3], 1 }
 0x9aa   :  { %1283 = vsyncpa [#allocation3 + $0x1], 1 }
 0x9ab   :  { %1284 = vsyncpa [#allocation6], 1 }
 0x9ac   :  { %1286 = vsyncpa [#allocation6 + $0x1], 1 }
 0x9ad   :  { %1287 = vsyncpa [#allocation9], 1 }
 0x9ae   :  { %1289 = vsyncpa [#allocation9 + $0x1], 1 }
 0x9af   :  { %1290 = vsyncpa [#allocation12], 1 }
 0x9b0   :  { %1291 = vsyncpa [#allocation4], 1 }
 0x9b1   :  { %1293 = vsyncpa [#allocation4 + $0x1], 1 }

</bundles_post_ra>
